<compile_context>
chip_gen: v7x
topology: tpu7x:2x2x1
jax: 0.10.0
libtpu: 0.0.40
codegen_flags: <defaults>
</compile_context>

<pallas_src>
import jax
import jax.numpy as jnp
from jax.experimental import pallas as pl
from jax.experimental.pallas import tpu as pltpu

LANE = 128
SUBLANE_F32 = 8


def _round_up(n, m):
    return pl.cdiv(n, m) * m


def _pad2d(a, shape):
    return jnp.pad(a, ((0, shape[0] - a.shape[0]), (0, shape[1] - a.shape[1])))


def _tensorcores_per_chip():
    """Best-effort detection of v7x (2 TensorCores/chip); defaults to 1."""
    try:
        kind = jax.devices()[0].device_kind.lower()
    except Exception:
        return 1
    return 2 if "v7" in kind else 1


def dqn_kernel(x_ref, w1_ref, b1_ref, w2_ref, b2_ref, w3_ref, b3_ref, o_ref):
    """One batch tile: fused 3-layer MLP.

    x and all intermediates/accumulators are f32; weights may arrive in bf16
    (HBM-traffic saver) and are widened in VMEM. Hidden dim is lane-padded to
    128; the output stays at its real width (masked store, tiny stream).
    """
    f32 = jnp.float32
    x = x_ref[...]                                   # (TB, in), f32

    h1 = jnp.dot(x, w1_ref[...].astype(f32), preferred_element_type=f32) + b1_ref[...]
    h1 = jnp.maximum(h1, 0.0)                        # (TB, H) f32, stays in VMEM

    h2 = jnp.dot(h1, w2_ref[...].astype(f32), preferred_element_type=f32) + b2_ref[...]
    h2 = jnp.maximum(h2, 0.0)                        # (TB, H) f32

    out = jnp.dot(h2, w3_ref[...].astype(f32), preferred_element_type=f32) + b3_ref[...]
    o_ref[...] = out.astype(o_ref.dtype)             # narrow (TB, out_size) store


def dqn_forward(x, params, *, block_batch=2048, weight_dtype=jnp.float32,
                min_pallas_batch=256, num_batch_splits=None):
    """Forward pass of the DQN MLP via a single batched Pallas kernel.

    x:      (batch, input_size) float array
    params: (w1, b1, w2, b2, w3, b3) with w_i shaped (in, out), b_i (1, out)
    """
    w1, b1, w2, b2, w3, b3 = params
    batch, in_size = x.shape
    hidden = w1.shape[1]
    out_size = w3.shape[1]

    # Small inference batches: the fused XLA MLP beats kernel launch + padding.
    if batch < min_pallas_batch:
        return dqn_reference(x.astype(jnp.float32), params)

    # Lane-dense padding of the hidden dim only (zero rows/cols keep ReLU math
    # exact). The output dim stays narrow (3) -> tiny HBM writeback stream.
    H = _round_up(hidden, LANE)

    xf = x.astype(jnp.float32)
    w1p = _pad2d(w1, (in_size, H)).astype(weight_dtype)
    b1p = _pad2d(b1, (1, H)).astype(jnp.float32)
    w2p = _pad2d(w2, (H, H)).astype(weight_dtype)
    b2p = _pad2d(b2, (1, H)).astype(jnp.float32)
    w3p = _pad2d(w3, (H, out_size)).astype(weight_dtype)
    b3p = b3.astype(jnp.float32)                     # (1, out_size)

    # --- Batch tiling -------------------------------------------------------
    padded_batch = _round_up(batch, SUBLANE_F32)

    if num_batch_splits is None:
        # v7x has 2 TensorCores: an even 2-step grid lets ("parallel",)
        # shard the batch across both cores. Single-TC chips keep 1 step.
        num_batch_splits = 2 if (_tensorcores_per_chip() == 2
                                 and padded_batch >= 1024) else 1
    num_batch_splits = max(1, int(num_batch_splits))

    # TB: as large as possible (one step per core), always a multiple of the
    # f32 sublane tile so Mosaic lowering never sees an illegal block dim.
    tb_split = _round_up(pl.cdiv(padded_batch, num_batch_splits), SUBLANE_F32)
    tb_cap = _round_up(min(block_batch, padded_batch), SUBLANE_F32)
    TB = min(tb_split, tb_cap)
    PB = _round_up(padded_batch, TB)
    grid = (PB // TB,)

    xp = jnp.pad(xf, ((0, PB - batch), (0, 0)))

    # --- Cost estimate (padded flops, narrow output bytes) ------------------
    w_item = jnp.dtype(weight_dtype).itemsize
    flops = 2 * PB * (in_size * H + H * H + H * out_size)
    bytes_accessed = (
        xp.size * 4
        + PB * out_size * 4
        + (w1p.size + w2p.size + w3p.size) * w_item
        + (b1p.size + b2p.size + b3p.size) * 4
    )

    out = pl.pallas_call(
        dqn_kernel,
        out_shape=jax.ShapeDtypeStruct((PB, out_size), jnp.float32),
        grid=grid,
        in_specs=[
            pl.BlockSpec((TB, in_size), lambda i: (i, 0)),   # x: batch-tiled
            pl.BlockSpec((in_size, H), lambda i: (0, 0)),    # weights/biases:
            pl.BlockSpec((1, H), lambda i: (0, 0)),          #  constant blocks,
            pl.BlockSpec((H, H), lambda i: (0, 0)),          #  fetched once and
            pl.BlockSpec((1, H), lambda i: (0, 0)),          #  resident in VMEM
            pl.BlockSpec((H, out_size), lambda i: (0, 0)),
            pl.BlockSpec((1, out_size), lambda i: (0, 0)),
        ],
        out_specs=pl.BlockSpec((TB, out_size), lambda i: (i, 0)),
        compiler_params=pltpu.CompilerParams(
            dimension_semantics=("parallel",)),
        cost_estimate=pl.CostEstimate(
            flops=flops, transcendentals=0, bytes_accessed=bytes_accessed),
    )(xp, w1p, b1p, w2p, b2p, w3p, b3p)

    return out[:batch]


def init_dqn_params(key, input_size, hidden_size=10, output_size=3):
    """Deterministic init matching nn.Linear shapes (stored transposed: (in, out))."""
    ks = jax.random.split(key, 6)

    def linear(kw, kb, fan_in, fan_out):
        bound = 1.0 / (fan_in ** 0.5)
        w = jax.random.uniform(kw, (fan_in, fan_out), jnp.float32, -bound, bound)
        b = jax.random.uniform(kb, (1, fan_out), jnp.float32, -bound, bound)
        return w, b

    w1, b1 = linear(ks[0], ks[1], input_size, hidden_size)
    w2, b2 = linear(ks[2], ks[3], hidden_size, hidden_size)
    w3, b3 = linear(ks[4], ks[5], hidden_size, output_size)
    return (w1, b1, w2, b2, w3, b3)


def dqn_reference(x, params):
    w1, b1, w2, b2, w3, b3 = params
    h1 = jnp.maximum(x @ w1 + b1, 0.0)
    h2 = jnp.maximum(h1 @ w2 + b2, 0.0)
    return h2 @ w3 + b3


if __name__ == "__main__":
    key = jax.random.PRNGKey(0)
    k_x, k_p = jax.random.split(key)

    input_size = 4       # small RL state vector
    hidden_size = 10     # matches module default
    output_size = 3      # matches module default
    batch = 512          # replay-buffer-sized batch (above the Pallas threshold)

    x = jax.random.normal(k_x, (batch, input_size), dtype=jnp.float32)
    params = init_dqn_params(k_p, input_size, hidden_size, output_size)
    ref = dqn_reference(x, params)

    # Default path: one large batch tile, narrow f32 output stream.
    out = jax.block_until_ready(dqn_forward(x, params))
    assert out.shape == (batch, output_size)
    assert jnp.allclose(out, ref, atol=1e-5, rtol=1e-5)

    # Multi-step grid path (small tile) — exercises the batch pipelining.
    out_grid = jax.block_until_ready(dqn_forward(x, params, block_batch=128))
    assert out_grid.shape == (batch, output_size)
    assert jnp.allclose(out_grid, ref, atol=1e-5, rtol=1e-5)

    # bf16 weights (HBM read-traffic saver on v6e/v7x); x, intermediates and
    # accumulation stay f32 for Q-value fidelity.
    out_bf16 = jax.block_until_ready(
        dqn_forward(x, params, weight_dtype=jnp.bfloat16))
    assert out_bf16.shape == (batch, output_size)
    assert jnp.allclose(out_bf16, ref, atol=5e-2, rtol=5e-2)

    # Small-batch dispatch falls back to the plain XLA path.
    out_small = jax.block_until_ready(dqn_forward(x[:32], params))
    assert out_small.shape == (32, output_size)
    assert jnp.allclose(out_small, ref[:32], atol=1e-5, rtol=1e-5)

    print("KERNEL_OK")
</pallas_src>

<mosaic_0001>
module attributes {stable_mosaic.version = 11 : i64} {
  func.func @dqn_kernel(%arg0: i32, %arg1: memref<512x4xf32, #tpu.memory_space<vmem>>, %arg2: memref<4x128xf32, #tpu.memory_space<vmem>>, %arg3: memref<1x128xf32, #tpu.memory_space<vmem>>, %arg4: memref<128x128xf32, #tpu.memory_space<vmem>>, %arg5: memref<1x128xf32, #tpu.memory_space<vmem>>, %arg6: memref<128x3xf32, #tpu.memory_space<vmem>>, %arg7: memref<1x3xf32, #tpu.memory_space<vmem>>, %arg8: memref<512x3xf32, #tpu.memory_space<vmem>>) attributes {dimension_semantics = [#tpu.dimension_semantics<parallel>], iteration_bounds = array<i64: 1>, scalar_prefetch = 0 : i64, scratch_operands = 0 : i64, tpu.core_type = #tpu.core_type<tc>, window_params = [{transform_indices = @transform_0, window_bounds = array<i64: 512, 4>}, {pipeline_mode = #tpu.pipeline_mode<synchronous>, transform_indices = @transform_1, window_bounds = array<i64: 4, 128>}, {pipeline_mode = #tpu.pipeline_mode<synchronous>, transform_indices = @transform_2, window_bounds = array<i64: 1, 128>}, {pipeline_mode = #tpu.pipeline_mode<synchronous>, transform_indices = @transform_3, window_bounds = array<i64: 128, 128>}, {pipeline_mode = #tpu.pipeline_mode<synchronous>, transform_indices = @transform_4, window_bounds = array<i64: 1, 128>}, {pipeline_mode = #tpu.pipeline_mode<synchronous>, transform_indices = @transform_5, window_bounds = array<i64: 128, 3>}, {pipeline_mode = #tpu.pipeline_mode<synchronous>, transform_indices = @transform_6, window_bounds = array<i64: 1, 3>}, {transform_indices = @transform_7, window_bounds = array<i64: 512, 3>}]} {
    %c0 = arith.constant 0 : index
    %c0_0 = arith.constant 0 : index
    %0 = vector.load %arg1[%c0, %c0_0] : memref<512x4xf32, #tpu.memory_space<vmem>>, vector<512x4xf32>
    %c0_1 = arith.constant 0 : index
    %c0_2 = arith.constant 0 : index
    %1 = vector.load %arg2[%c0_1, %c0_2] : memref<4x128xf32, #tpu.memory_space<vmem>>, vector<4x128xf32>
    %cst = arith.constant dense<0.000000e+00> : vector<512x128xf32>
    %2 = tpu.matmul %0, %1, %cst {dimension_numbers = #tpu.dot_dimension_numbers<[1], [0], [0], [1], [0, 0, 1, 1], [], []>} : vector<512x4xf32>, vector<4x128xf32>, vector<512x128xf32> -> vector<512x128xf32>
    %c0_3 = arith.constant 0 : index
    %c0_4 = arith.constant 0 : index
    %3 = vector.load %arg3[%c0_3, %c0_4] : memref<1x128xf32, #tpu.memory_space<vmem>>, vector<1x128xf32>
    %4 = vector.broadcast %3 : vector<1x128xf32> to vector<512x128xf32>
    %5 = arith.addf %2, %4 : vector<512x128xf32>
    %cst_5 = arith.constant 0.000000e+00 : f32
    %6 = vector.broadcast %cst_5 : f32 to vector<512x128xf32>
    %7 = arith.maximumf %5, %6 : vector<512x128xf32>
    %c0_6 = arith.constant 0 : index
    %c0_7 = arith.constant 0 : index
    %8 = vector.load %arg4[%c0_6, %c0_7] : memref<128x128xf32, #tpu.memory_space<vmem>>, vector<128x128xf32>
    %cst_8 = arith.constant dense<0.000000e+00> : vector<512x128xf32>
    %9 = tpu.matmul %7, %8, %cst_8 {dimension_numbers = #tpu.dot_dimension_numbers<[1], [0], [0], [1], [0, 0, 1, 1], [], []>} : vector<512x128xf32>, vector<128x128xf32>, vector<512x128xf32> -> vector<512x128xf32>
    %c0_9 = arith.constant 0 : index
    %c0_10 = arith.constant 0 : index
    %10 = vector.load %arg5[%c0_9, %c0_10] : memref<1x128xf32, #tpu.memory_space<vmem>>, vector<1x128xf32>
    %11 = vector.broadcast %10 : vector<1x128xf32> to vector<512x128xf32>
    %12 = arith.addf %9, %11 : vector<512x128xf32>
    %cst_11 = arith.constant 0.000000e+00 : f32
    %13 = vector.broadcast %cst_11 : f32 to vector<512x128xf32>
    %14 = arith.maximumf %12, %13 : vector<512x128xf32>
    %c0_12 = arith.constant 0 : index
    %c0_13 = arith.constant 0 : index
    %15 = vector.load %arg6[%c0_12, %c0_13] : memref<128x3xf32, #tpu.memory_space<vmem>>, vector<128x3xf32>
    %cst_14 = arith.constant dense<0.000000e+00> : vector<512x3xf32>
    %16 = tpu.matmul %14, %15, %cst_14 {dimension_numbers = #tpu.dot_dimension_numbers<[1], [0], [0], [1], [0, 0, 1, 1], [], []>} : vector<512x128xf32>, vector<128x3xf32>, vector<512x3xf32> -> vector<512x3xf32>
    %c0_15 = arith.constant 0 : index
    %c0_16 = arith.constant 0 : index
    %17 = vector.load %arg7[%c0_15, %c0_16] : memref<1x3xf32, #tpu.memory_space<vmem>>, vector<1x3xf32>
    %18 = vector.broadcast %17 : vector<1x3xf32> to vector<512x3xf32>
    %19 = arith.addf %16, %18 : vector<512x3xf32>
    %c0_17 = arith.constant 0 : index
    %c0_18 = arith.constant 0 : index
    %20 = vector.load %arg8[%c0_17, %c0_18] : memref<512x3xf32, #tpu.memory_space<vmem>>, vector<512x3xf32>
    tpu.vector_store %arg8[%c0_17, %c0_18], %19 {strides = array<i32>} : memref<512x3xf32, #tpu.memory_space<vmem>>, vector<512x3xf32>,
    return
  }
  func.func @transform_0(%arg0: i32) -> (i32, i32) {
    %c0_i32 = arith.constant 0 : i32
    %c0_i32_0 = arith.constant 0 : i32
    return %arg0, %c0_i32 : i32, i32
  }
  func.func @transform_1(%arg0: i32) -> (i32, i32) {
    %c0_i32 = arith.constant 0 : i32
    %c0_i32_0 = arith.constant 0 : i32
    %c0_i32_1 = arith.constant 0 : i32
    return %c0_i32, %c0_i32_0 : i32, i32
  }
  func.func @transform_2(%arg0: i32) -> (i32, i32) {
    %c0_i32 = arith.constant 0 : i32
    %c0_i32_0 = arith.constant 0 : i32
    %c0_i32_1 = arith.constant 0 : i32
    return %c0_i32, %c0_i32_0 : i32, i32
  }
  func.func @transform_3(%arg0: i32) -> (i32, i32) {
    %c0_i32 = arith.constant 0 : i32
    %c0_i32_0 = arith.constant 0 : i32
    %c0_i32_1 = arith.constant 0 : i32
    return %c0_i32, %c0_i32_0 : i32, i32
  }
  func.func @transform_4(%arg0: i32) -> (i32, i32) {
    %c0_i32 = arith.constant 0 : i32
    %c0_i32_0 = arith.constant 0 : i32
    %c0_i32_1 = arith.constant 0 : i32
    return %c0_i32, %c0_i32_0 : i32, i32
  }
  func.func @transform_5(%arg0: i32) -> (i32, i32) {
    %c0_i32 = arith.constant 0 : i32
    %c0_i32_0 = arith.constant 0 : i32
    %c0_i32_1 = arith.constant 0 : i32
    return %c0_i32, %c0_i32_0 : i32, i32
  }
  func.func @transform_6(%arg0: i32) -> (i32, i32) {
    %c0_i32 = arith.constant 0 : i32
    %c0_i32_0 = arith.constant 0 : i32
    %c0_i32_1 = arith.constant 0 : i32
    return %c0_i32, %c0_i32_0 : i32, i32
  }
  func.func @transform_7(%arg0: i32) -> (i32, i32) {
    %c0_i32 = arith.constant 0 : i32
    %c0_i32_0 = arith.constant 0 : i32
    return %arg0, %c0_i32 : i32, i32
  }
}

</mosaic_0001>

<bundles_post_ra>
// kernel: tpu_custom_call.1
= control target key start
LH: loop header
LB: loop body
LE: loop exit
PB: predicated region body
PF: predicated region fallthrough
CT: control target
= control target key end

     0   :  { %vm291_vm0 = vcmask 1043456   ;;  %vm98_vm1 = vcmask 31744   ;;  %vm1624_vm2 = vcmask 23552   ;;  %s3360_s1 = inlined_call_operand.vmem [shape: f32[4,128], index: 1, kind: input, shape index: {}]   ;;  %s3361_s0 = inlined_call_operand.vmem [shape: f32[512,4], index: 0, kind: input, shape index: {}]   ;;  %s3362_s3 = inlined_call_operand.vmem [shape: f32[128,128], index: 3, kind: input, shape index: {}]   ;;  %s3363_s2 = inlined_call_operand.vmem [shape: f32[1,128], index: 2, kind: input, shape index: {}]   ;;  %s3364_s5 = inlined_call_operand.vmem [shape: f32[128,3], index: 5, kind: input, shape index: {}]   ;;  %s3365_s4 = inlined_call_operand.vmem [shape: f32[1,128], index: 4, kind: input, shape index: {}]   ;;  %s3366_s6 = inlined_call_operand.vmem [shape: f32[1,3], index: 6, kind: input, shape index: {}]   ;;  %s3367_s7 = inlined_call_operand.vmem [shape: f32[512,3], index: 7, kind: output, shape index: {}]  }
   0x1   :  { %v90_v0 = vld [vmem:[%s3360_s1] sm:$0xf]  ;;  %v27_v2 = vld [vmem:[%s3361_s0 + $0x8] sm:$0xff]  ;;  %v28_v3 = vld [vmem:[%s3361_s0 + $0x10] sm:$0xff] }
   0x2   :  { %v26_v1 = vld [vmem:[%s3361_s0] sm:$0xff]  ;;  %1986 = vmatprep.subr.msk.mxu0 %vm291_vm0, %v90_v0  ;;  %2404 = vmatprep.subr.msk.mxu1 %vm291_vm0, %v90_v0  ;;  %v29_v4 = vld [vmem:[%s3361_s0 + $0x18] sm:$0xff]  ;;  %v31_v6 = vld [vmem:[%s3361_s0 + $0x28] sm:$0xff] }
   0x3   :  { %1988 = vmatprep.mubr.msk.f32.mxu0 %vm98_vm1, %v26_v1  ;;  %1987 = vmatpush3.msk.msra.mxu0 %vm291_vm0, %v90_v0  ;;  %v30_v5 = vld [vmem:[%s3361_s0 + $0x20] sm:$0xff]  ;;  %v32_v7 = vld [vmem:[%s3361_s0 + $0x30] sm:$0xff]  ;;  %v59_v9 = vld [vmem:[%s3361_s0 + $0x108] sm:$0xff] }
   0x4   :  { %1989 = vmatmul.mubr.msk.f32.vlgmr.msra.gmra.mrb[0].mxu0 %vm98_vm1, %v27_v2  ;;  %2405 = vmatpush3.msk.msra.mxu1 %vm291_vm0, %v90_v0  ;;  %v58_v8 = vld [vmem:[%s3361_s0 + $0x100] sm:$0xff]  ;;  %v60_v10 = vld [vmem:[%s3361_s0 + $0x110] sm:$0xff]  ;;  %v33_v11 = vld [vmem:[%s3361_s0 + $0x38] sm:$0xff] }
   0x5   :  { %1991 = vmatprep.mubr.msk.f32.mxu0 %vm98_vm1, %v28_v3  ;;  %2036 = vmatprep.mubr.msk.f32.mxu1 %vm98_vm1, %v58_v8  ;;  %v34_v12 = vld [vmem:[%s3361_s0 + $0x40] sm:$0xff]  ;;  %v61_v13 = vld [vmem:[%s3361_s0 + $0x118] sm:$0xff]  ;;  %v35_v15 = vld [vmem:[%s3361_s0 + $0x48] sm:$0xff] }
   0x6   :  { %2037 = vmatmul.mubr.msk.f32.vlgmr.msra.gmra.mrb[0].mxu1 %vm98_vm1, %v59_v9  ;;  %v62_v14 = vld [vmem:[%s3361_s0 + $0x120] sm:$0xff]  ;;  %v36_v16 = vld [vmem:[%s3361_s0 + $0x50] sm:$0xff]  ;;  %v63_v17 = vld [vmem:[%s3361_s0 + $0x128] sm:$0xff] }
   0x7   :  { %2039 = vmatprep.mubr.msk.f32.mxu1 %vm98_vm1, %v60_v10  ;;  %v64_v18 = vld [vmem:[%s3361_s0 + $0x130] sm:$0xff]  ;;  %v37_v19 = vld [vmem:[%s3361_s0 + $0x58] sm:$0xff]  ;;  %v38_v20 = vld [vmem:[%s3361_s0 + $0x60] sm:$0xff] }
   0x8   :  { %1992 = vmatmul.mubr.msk.f32.gmra.mrb[2].mxu0 %vm98_vm1, %v29_v4  ;;  %v65_v21 = vld [vmem:[%s3361_s0 + $0x138] sm:$0xff]  ;;  %v744_v22 = vld [vmem:[%s3362_s3] sm:$0xff]  ;;  %v745_v23 = vld [vmem:[%s3362_s3 + $0x8] sm:$0xff] }
   0x9   :  { %1994 = vmatprep.mubr.msk.f32.mxu0 %vm98_vm1, %v30_v5  ;;  %v746_v24 = vld [vmem:[%s3362_s3 + $0x10] sm:$0xff]  ;;  %v747_v25 = vld [vmem:[%s3362_s3 + $0x18] sm:$0xff]  ;;  %v66_v26 = vld [vmem:[%s3361_s0 + $0x140] sm:$0xff]  ;;  %v2340_v27 = vpack.c.bf16 %v745_v23, %v744_v22 }
   0xa   :  { %2040 = vmatmul.mubr.msk.f32.gmra.mrb[2].mxu1 %vm98_vm1, %v61_v13  ;;  %v2344_v28 = vpack.c.bf16 %v747_v25, %v746_v24  ;;  %v39_v29 = vld [vmem:[%s3361_s0 + $0x68] sm:$0xff]  ;;  %v748_v30 = vld [vmem:[%s3362_s3 + $0x20] sm:$0xff]  ;;  %v40_v32 = vld [vmem:[%s3361_s0 + $0x70] sm:$0xff] }
   0xb   :  { %2042 = vmatprep.mubr.msk.f32.mxu1 %vm98_vm1, %v62_v14  ;;  %v749_v31 = vld [vmem:[%s3362_s3 + $0x28] sm:$0xff]  ;;  %2341 = vmatprep.subr.bf16.mxu1 %v2340_v27  ;;  %v68_v34 = vld [vmem:[%s3361_s0 + $0x150] sm:$0xff]  ;;  %v41_v36 = vld [vmem:[%s3361_s0 + $0x78] sm:$0xff] }
   0xc   :  { %1995 = vmatmul.mubr.msk.f32.gmra.mrb[4].mxu0 %vm98_vm1, %v31_v6  ;;  %v67_v33 = vld [vmem:[%s3361_s0 + $0x148] sm:$0xff]  ;;  %2343 = vmatpush3.bf16.msra.mxu1 %v2340_v27  ;;  %v2348_v35 = vpack.c.bf16 %v749_v31, %v748_v30  ;;  %v750_v37 = vld [vmem:[%s3362_s3 + $0x30] sm:$0xff]  ;;  %v751_v38 = vld [vmem:[%s3362_s3 + $0x38] sm:$0xff] }
   0xd   :  { %1997 = vmatprep.mubr.msk.f32.mxu0 %vm98_vm1, %v32_v7  ;;  %2345 = vmatprep.subr.bf16.mxu1 %v2344_v28  ;;  %v42_v39 = vld [vmem:[%s3361_s0 + $0x80] sm:$0xff]  ;;  %v69_v40 = vld [vmem:[%s3361_s0 + $0x158] sm:$0xff]  ;;  %v2352_v42 = vpack.c.bf16 %v751_v38, %v750_v37  ;;  %v43_v43 = vld [vmem:[%s3361_s0 + $0x88] sm:$0xff] }
   0xe   :  { %2043 = vmatmul.mubr.msk.f32.gmra.mrb[4].mxu1 %vm98_vm1, %v63_v17  ;;  %v70_v41 = vld [vmem:[%s3361_s0 + $0x160] sm:$0xff]  ;;  %v753_v45 = vld [vmem:[%s3362_s3 + $0x48] sm:$0xff]  ;;  %v44_v46 = vld [vmem:[%s3361_s0 + $0x90] sm:$0xff] }
   0xf   :  { %2045 = vmatprep.mubr.msk.f32.mxu1 %vm98_vm1, %v64_v18  ;;  %v752_v44 = vld [vmem:[%s3362_s3 + $0x40] sm:$0xff]  ;;  %v71_v47 = vld [vmem:[%s3361_s0 + $0x168] sm:$0xff]  ;;  %v72_v48 = vld [vmem:[%s3361_s0 + $0x170] sm:$0xff] }
  0x10   :  { %1998 = vmatmul.mubr.msk.f32.gmra.mrb[6].mxu0 %vm98_vm1, %v33_v11  ;;  %2347 = vmatpush3.bf16.msra.mxu1 %v2344_v28  ;;  %v2356_v49 = vpack.c.bf16 %v753_v45, %v752_v44  ;;  %v45_v50 = vld [vmem:[%s3361_s0 + $0x98] sm:$0xff]  ;;  %v754_v51 = vld [vmem:[%s3362_s3 + $0x50] sm:$0xff]  ;;  %v46_v53 = vld [vmem:[%s3361_s0 + $0xa0] sm:$0xff] }
  0x11   :  { %2000 = vmatprep.mubr.msk.f32.mxu0 %vm98_vm1, %v34_v12  ;;  %2349 = vmatprep.subr.bf16.mxu1 %v2348_v35  ;;  %v755_v52 = vld [vmem:[%s3362_s3 + $0x58] sm:$0xff]  ;;  %v74_v55 = vld [vmem:[%s3361_s0 + $0x180] sm:$0xff]  ;;  %v47_v57 = vld [vmem:[%s3361_s0 + $0xa8] sm:$0xff] }
  0x12   :  { %2046 = vmatmul.mubr.msk.f32.gmra.mrb[6].mxu1 %vm98_vm1, %v65_v21  ;;  %v73_v54 = vld [vmem:[%s3361_s0 + $0x178] sm:$0xff]  ;;  %v2360_v56 = vpack.c.bf16 %v755_v52, %v754_v51  ;;  %v756_v58 = vld [vmem:[%s3362_s3 + $0x60] sm:$0xff]  ;;  %v757_v59 = vld [vmem:[%s3362_s3 + $0x68] sm:$0xff] }
  0x13   :  { %2048 = vmatprep.mubr.msk.f32.mxu1 %vm98_vm1, %v66_v26  ;;  %v48_v60 = vld [vmem:[%s3361_s0 + $0xb0] sm:$0xff]  ;;  %v75_v61 = vld [vmem:[%s3361_s0 + $0x188] sm:$0xff]  ;;  %v2364_v63 = vpack.c.bf16 %v757_v59, %v756_v58  ;;  %v49_v0 = vld [vmem:[%s3361_s0 + $0xb8] sm:$0xff] }
  0x14   :  { %2001 = vmatmul.mubr.msk.f32.gmra.mrb[8].mxu0 %vm98_vm1, %v35_v15  ;;  %2351 = vmatpush3.bf16.msra.mxu1 %v2348_v35  ;;  %v76_v62 = vld [vmem:[%s3361_s0 + $0x190] sm:$0xff]  ;;  %v759_v2 = vld [vmem:[%s3362_s3 + $0x78] sm:$0xff]  ;;  %v50_v3 = vld [vmem:[%s3361_s0 + $0xc0] sm:$0xff] }
  0x15   :  { %2003 = vmatprep.mubr.msk.f32.mxu0 %vm98_vm1, %v36_v16  ;;  %2353 = vmatprep.subr.bf16.mxu1 %v2352_v42  ;;  %v758_v1 = vld [vmem:[%s3362_s3 + $0x70] sm:$0xff]  ;;  %v77_v4 = vld [vmem:[%s3361_s0 + $0x198] sm:$0xff]  ;;  %v78_v5 = vld [vmem:[%s3361_s0 + $0x1a0] sm:$0xff] }
  0x16   :  { %2049 = vmatmul.mubr.msk.f32.gmra.mrb[8].mxu1 %vm98_vm1, %v67_v33  ;;  %v2368_v6 = vpack.c.bf16 %v759_v2, %v758_v1  ;;  %v51_v7 = vld [vmem:[%s3361_s0 + $0xc8] sm:$0xff]  ;;  %v52_v8 = vld [vmem:[%s3361_s0 + $0xd0] sm:$0xff]  ;;  %v53_v11 = vld [vmem:[%s3361_s0 + $0xd8] sm:$0xff] }
  0x17   :  { %2051 = vmatprep.mubr.msk.f32.mxu1 %vm98_vm1, %v68_v34  ;;  %v79_v9 = vld [vmem:[%s3361_s0 + $0x1a8] sm:$0xff]  ;;  %v80_v10 = vld [vmem:[%s3361_s0 + $0x1b0] sm:$0xff]  ;;  %v54_v12 = vld [vmem:[%s3361_s0 + $0xe0] sm:$0xff] }
  0x18   :  { %2004 = vmatmul.mubr.msk.f32.gmra.mrb[10].mxu0 %vm98_vm1, %v37_v19  ;;  %2355 = vmatpush3.bf16.msra.mxu1 %v2352_v42  ;;  %v81_v13 = vld [vmem:[%s3361_s0 + $0x1b8] sm:$0xff]  ;;  %v82_v14 = vld [vmem:[%s3361_s0 + $0x1c0] sm:$0xff]  ;;  %v55_v15 = vld [vmem:[%s3361_s0 + $0xe8] sm:$0xff] }
  0x19   :  { %2006 = vmatprep.mubr.msk.f32.mxu0 %vm98_vm1, %v38_v20  ;;  %2357 = vmatprep.subr.bf16.mxu1 %v2356_v49  ;;  %v56_v16 = vld [vmem:[%s3361_s0 + $0xf0] sm:$0xff]  ;;  %v83_v17 = vld [vmem:[%s3361_s0 + $0x1c8] sm:$0xff]  ;;  %v57_v19 = vld [vmem:[%s3361_s0 + $0xf8] sm:$0xff] }
  0x1a   :  { %2052 = vmatmul.mubr.msk.f32.gmra.mrb[10].mxu1 %vm98_vm1, %v69_v40  ;;  %v84_v18 = vld [vmem:[%s3361_s0 + $0x1d0] sm:$0xff]  ;;  %v85_v20 = vld [vmem:[%s3361_s0 + $0x1d8] sm:$0xff]  ;;  %v86_v21 = vld [vmem:[%s3361_s0 + $0x1e0] sm:$0xff] }
  0x1b   :  { %2054 = vmatprep.mubr.msk.f32.mxu1 %vm98_vm1, %v70_v41  ;;  %v87_v22 = vld [vmem:[%s3361_s0 + $0x1e8] sm:$0xff]  ;;  %v88_v23 = vld [vmem:[%s3361_s0 + $0x1f0] sm:$0xff]  ;;  %v89_v24 = vld [vmem:[%s3361_s0 + $0x1f8] sm:$0xff] }
  0x1c   :  { %2007 = vmatmul.mubr.msk.f32.gmra.mrb[12].mxu0 %vm98_vm1, %v39_v29  ;;  %2359 = vmatpush3.bf16.msra.mxu1 %v2356_v49  ;;  %v2756_v25 = vld [vmem:[%s3363_s2] ss:$0 sm:$0xff]  ;;  %v1217_v33 = vld [vmem:[%s3364_s5 + $0x8] sm:$0xff]  ;;  %v1218_v34 = vld [vmem:[%s3364_s5 + $0x10] sm:$0xff] }
  0x1d   :  { %2009 = vmatprep.mubr.msk.f32.mxu0 %vm98_vm1, %v40_v32  ;;  %2361 = vmatprep.subr.bf16.mxu1 %v2360_v56  ;;  %v1216_v32 = vld [vmem:[%s3364_s5] sm:$0xff]  ;;  %v1222_v52 = vld [vmem:[%s3364_s5 + $0x30] sm:$0xff] }
  0x1e   :  { %2055 = vmatmul.mubr.msk.f32.gmra.mrb[12].mxu1 %vm98_vm1, %v71_v47  ;;  %v2372_v38 = vpack.c.bf16 %v1217_v33, %v1216_v32  ;;  %v1220_v42 = vld [vmem:[%s3364_s5 + $0x20] sm:$0xff]  ;;  %v1230_v33 = vld [vmem:[%s3364_s5 + $0x70] sm:$0xff] }
  0x1f   :  { %2057 = vmatprep.mubr.msk.f32.mxu1 %vm98_vm1, %v72_v48 }
  0x20   :  { %2010 = vmatmul.mubr.msk.f32.gmra.mrb[14].mxu0 %vm98_vm1, %v41_v36  ;;  %2363 = vmatpush3.bf16.msra.mxu1 %v2360_v56 }
  0x21   :  { %2012 = vmatprep.mubr.msk.f32.mxu0 %vm98_vm1, %v42_v39  ;;  %2365 = vmatprep.subr.bf16.mxu1 %v2364_v63  ;;  %v1219_v39 = vld [vmem:[%s3364_s5 + $0x18] sm:$0xff] }
  0x22   :  { %2058 = vmatmul.mubr.msk.f32.gmra.mrb[14].mxu1 %vm98_vm1, %v73_v54  ;;  %v2376_v41 = vpack.c.bf16 %v1219_v39, %v1218_v34  ;;  %2373 = vmatprep.subr.bf16.mxu0 %v2372_v38  ;;  %v1231_v34 = vld [vmem:[%s3364_s5 + $0x78] sm:$0xff] }
  0x23   :  { %2060 = vmatprep.mubr.msk.f32.mxu1 %vm98_vm1, %v74_v55  ;;  %2375 = vmatpush3.bf16.msra.mxu0 %v2372_v38 }
  0x24   :  { %2013 = vmatmul.mubr.msk.f32.gmra.mrb[16].mxu0 %vm98_vm1, %v43_v43  ;;  %2367 = vmatpush3.bf16.msra.mxu1 %v2364_v63  ;;  %v1221_v43 = vld [vmem:[%s3364_s5 + $0x28] sm:$0xff]  ;;  %v1224_v63 = vld [vmem:[%s3364_s5 + $0x40] sm:$0xff] }
  0x25   :  { %2015 = vmatprep.mubr.msk.f32.mxu0 %vm98_vm1, %v44_v46  ;;  %2369 = vmatprep.subr.bf16.mxu1 %v2368_v6  ;;  %v2380_v49 = vpack.c.bf16 %v1221_v43, %v1220_v42 }
  0x26   :  { %2061 = vmatmul.mubr.msk.f32.gmra.mrb[16].mxu1 %vm98_vm1, %v75_v61  ;;  %2377 = vmatprep.subr.bf16.mxu0 %v2376_v41 }
  0x27   :  { %2063 = vmatprep.mubr.msk.f32.mxu1 %vm98_vm1, %v76_v62  ;;  %2379 = vmatpush3.bf16.msra.mxu0 %v2376_v41  ;;  %v2400_v41 = vpack.c.bf16 %v1231_v34, %v1230_v33 }
  0x28   :  { %2016 = vmatmul.mubr.msk.f32.gmra.mrb[18].mxu0 %vm98_vm1, %v45_v50  ;;  %2371 = vmatpush3.bf16.msra.mxu1 %v2368_v6 }
  0x29   :  { %2018 = vmatprep.mubr.msk.f32.mxu0 %vm98_vm1, %v46_v53  ;;  %v1223_v53 = vld [vmem:[%s3364_s5 + $0x38] sm:$0xff]  ;;  %2381 = vmatprep.subr.bf16.mxu0 %v2380_v49 }
  0x2a   :  { %2064 = vmatmul.mubr.msk.f32.gmra.mrb[18].mxu1 %vm98_vm1, %v77_v4 }
  0x2b   :  { %2066 = vmatprep.mubr.msk.f32.mxu1 %vm98_vm1, %v78_v5  ;;  %2383 = vmatpush3.bf16.msra.mxu0 %v2380_v49 }
  0x2c   :  { %2019 = vmatmul.mubr.msk.f32.gmra.mrb[20].mxu0 %vm98_vm1, %v47_v57 }
  0x2d   :  { %2021 = vmatprep.mubr.msk.f32.mxu0 %vm98_vm1, %v48_v60  ;;  %v2384_v60 = vpack.c.bf16 %v1223_v53, %v1222_v52 }
  0x2e   :  { %2067 = vmatmul.mubr.msk.f32.gmra.mrb[20].mxu1 %vm98_vm1, %v79_v9 }
  0x2f   :  { %2069 = vmatprep.mubr.msk.f32.mxu1 %vm98_vm1, %v80_v10  ;;  %2385 = vmatprep.subr.bf16.mxu0 %v2384_v60  ;;  %v1226_v10 = vld [vmem:[%s3364_s5 + $0x50] sm:$0xff] }
  0x30   :  { %2022 = vmatmul.mubr.msk.f32.gmra.mrb[22].mxu0 %vm98_vm1, %v49_v0  ;;  %v1225_v0 = vld [vmem:[%s3364_s5 + $0x48] sm:$0xff] }
  0x31   :  { %2024 = vmatprep.mubr.msk.f32.mxu0 %vm98_vm1, %v50_v3  ;;  %2387 = vmatpush3.bf16.msra.mxu0 %v2384_v60 }
  0x32   :  { %2070 = vmatmul.mubr.msk.f32.gmra.mrb[22].mxu1 %vm98_vm1, %v81_v13 }
  0x33   :  { %2072 = vmatprep.mubr.msk.f32.mxu1 %vm98_vm1, %v82_v14 }
  0x34   :  { %2025 = vmatmul.mubr.msk.f32.gmra.mrb[24].mxu0 %vm98_vm1, %v51_v7  ;;  %v2388_v7 = vpack.c.bf16 %v1225_v0, %v1224_v63 }
  0x35   :  { %2027 = vmatprep.mubr.msk.f32.mxu0 %vm98_vm1, %v52_v8 }
  0x36   :  { %2073 = vmatmul.mubr.msk.f32.gmra.mrb[24].mxu1 %vm98_vm1, %v83_v17  ;;  %2389 = vmatprep.subr.bf16.mxu0 %v2388_v7 }
  0x37   :  { %2075 = vmatprep.mubr.msk.f32.mxu1 %vm98_vm1, %v84_v18  ;;  %2391 = vmatpush3.bf16.msra.mxu0 %v2388_v7 }
  0x38   :  { %2028 = vmatmul.mubr.msk.f32.gmra.mrb[26].mxu0 %vm98_vm1, %v53_v11  ;;  %v1227_v11 = vld [vmem:[%s3364_s5 + $0x58] sm:$0xff] }
  0x39   :  { %2030 = vmatprep.mubr.msk.f32.mxu0 %vm98_vm1, %v54_v12  ;;  %v2392_v18 = vpack.c.bf16 %v1227_v11, %v1226_v10 }
  0x3a   :  { %2076 = vmatmul.mubr.msk.f32.gmra.mrb[26].mxu1 %vm98_vm1, %v85_v20 }
  0x3b   :  { %2078 = vmatprep.mubr.msk.f32.mxu1 %vm98_vm1, %v86_v21  ;;  %v1228_v21 = vld [vmem:[%s3364_s5 + $0x60] sm:$0xff]  ;;  %2393 = vmatprep.subr.bf16.mxu0 %v2392_v18 }
  0x3c   :  { %2031 = vmatmul.mubr.msk.f32.gmra.mrb[28].mxu0 %vm98_vm1, %v55_v15 }
  0x3d   :  { %2033 = vmatprep.mubr.msk.f32.mxu0 %vm98_vm1, %v56_v16  ;;  %2395 = vmatpush3.bf16.msra.mxu0 %v2392_v18 }
  0x3e   :  { %2079 = vmatmul.mubr.msk.f32.gmra.mrb[28].mxu1 %vm98_vm1, %v87_v22  ;;  %v1229_v22 = vld [vmem:[%s3364_s5 + $0x68] sm:$0xff] }
  0x3f   :  { %2081 = vmatprep.mubr.msk.f32.mxu1 %vm98_vm1, %v88_v23 }
  0x40   :  { %2034 = vmatmul.mubr.msk.f32.gmra.mrb[30].mxu0 %vm98_vm1, %v57_v19 }
  0x42   :  { %2082 = vmatmul.mubr.msk.f32.gmra.mrb[30].mxu1 %vm98_vm1, %v89_v24 }
  0xd7   :  { %v1990_v26 = vpop.f32.mrb[0].mxu0 }
  0xd8   :  { %v367_v27 = vadd.f32 %v1990_v26, %v2756_v25  ;;  %v361_v28 = vpop.f32.mrb[1].mxu0 }
  0xd9   :  { %v362_v29 = vadd.f32 %v2756_v25, %v361_v28  ;;  %v2782_v51 = vpop.f32.mrb[0].mxu1 }
  0xda   :  { %v681_v35 = vmax.f32 %v367_v27, 0.0  ;;  %v2790_v54 = vpop.f32.mrb[1].mxu1 }
  0xdb   :  { %v680_v30 = vmax.f32 %v362_v29, 0.0  ;;  %v1993_v31 = vpop.f32.mrb[2].mxu0 }
  0xdc   :  { %v377_v36 = vadd.f32 %v1993_v31, %v2756_v25  ;;  %v371_v37 = vpop.f32.mrb[3].mxu0 }
  0xdd   :  { %v372_v40 = vadd.f32 %v2756_v25, %v371_v37  ;;  %2116 = vmatprep.mubr.f32.mxu1 %v680_v30  ;;  %v2794_v62 = vpop.f32.mrb[2].mxu1  ;;  %v2396_v30 = vpack.c.bf16 %v1229_v22, %v1228_v21 }
  0xde   :  { %2117 = vmatmul.mubr.f32.vlgmr.msra.gmra.mrb[32].mxu1 %v681_v35  ;;  %v683_v46 = vmax.f32 %v377_v36, 0.0  ;;  %v2802_v1 = vpop.f32.mrb[3].mxu1 }
  0xdf   :  { %v682_v44 = vmax.f32 %v372_v40, 0.0  ;;  %v1996_v45 = vpop.f32.mrb[4].mxu0  ;;  %2397 = vmatprep.subr.bf16.mxu0 %v2396_v30 }
  0xe0   :  { %v387_v47 = vadd.f32 %v1996_v45, %v2756_v25  ;;  %v381_v48 = vpop.f32.mrb[5].mxu0  ;;  %2399 = vmatpush3.bf16.msra.mxu0 %v2396_v30 }
  0xe1   :  { %v382_v50 = vadd.f32 %v2756_v25, %v381_v48  ;;  %2119 = vmatprep.mubr.f32.mxu1 %v682_v44  ;;  %v2806_v9 = vpop.f32.mrb[4].mxu1  ;;  %2401 = vmatprep.subr.bf16.mxu0 %v2400_v41 }
  0xe2   :  { %2120 = vmatmul.mubr.f32.gmra.mrb[34].mxu1 %v683_v46  ;;  %v685_v57 = vmax.f32 %v387_v47, 0.0  ;;  %v2814_v12 = vpop.f32.mrb[5].mxu1 }
  0xe3   :  { %v684_v55 = vmax.f32 %v382_v50, 0.0  ;;  %v1999_v56 = vpop.f32.mrb[6].mxu0 }
  0xe4   :  { %v397_v58 = vadd.f32 %v1999_v56, %v2756_v25  ;;  %v391_v59 = vpop.f32.mrb[7].mxu0  ;;  %2403 = vmatpush3.bf16.msra.mxu0 %v2400_v41 }
  0xe5   :  { %v392_v61 = vadd.f32 %v2756_v25, %v391_v59  ;;  %2122 = vmatprep.mubr.f32.mxu1 %v684_v55  ;;  %v2818_v20 = vpop.f32.mrb[6].mxu1 }
  0xe6   :  { %2123 = vmatmul.mubr.f32.gmra.mrb[36].mxu1 %v685_v57  ;;  %v687_v4 = vmax.f32 %v397_v58, 0.0  ;;  %v2826_v23 = vpop.f32.mrb[7].mxu1 }
  0xe7   :  { %v686_v2 = vmax.f32 %v392_v61, 0.0  ;;  %v2002_v3 = vpop.f32.mrb[8].mxu0 }
  0xe8   :  { %v407_v5 = vadd.f32 %v2002_v3, %v2756_v25  ;;  %v401_v6 = vpop.f32.mrb[9].mxu0 }
  0xe9   :  { %v402_v8 = vadd.f32 %v2756_v25, %v401_v6  ;;  %2125 = vmatprep.mubr.f32.mxu1 %v686_v2  ;;  %v2830_v32 = vpop.f32.mrb[8].mxu1 }
  0xea   :  { %2126 = vmatmul.mubr.f32.gmra.mrb[38].mxu1 %v687_v4  ;;  %v689_v15 = vmax.f32 %v407_v5, 0.0  ;;  %v2838_v35 = vpop.f32.mrb[9].mxu1 }
  0xeb   :  { %v688_v13 = vmax.f32 %v402_v8, 0.0  ;;  %v2005_v14 = vpop.f32.mrb[10].mxu0 }
  0xec   :  { %v417_v16 = vadd.f32 %v2005_v14, %v2756_v25  ;;  %v411_v17 = vpop.f32.mrb[11].mxu0 }
  0xed   :  { %v412_v19 = vadd.f32 %v2756_v25, %v411_v17  ;;  %2128 = vmatprep.mubr.f32.mxu1 %v688_v13  ;;  %v2842_v43 = vpop.f32.mrb[10].mxu1 }
  0xee   :  { %2129 = vmatmul.mubr.f32.gmra.mrb[40].mxu1 %v689_v15  ;;  %v691_v27 = vmax.f32 %v417_v16, 0.0  ;;  %v2844_v44 = vpop.f32.mrb[11].mxu1 }
  0xef   :  { %v690_v24 = vmax.f32 %v412_v19, 0.0  ;;  %v2008_v26 = vpop.f32.mrb[12].mxu0 }
  0xf0   :  { %v427_v28 = vadd.f32 %v2008_v26, %v2756_v25  ;;  %v421_v29 = vpop.f32.mrb[13].mxu0 }
  0xf1   :  { %v422_v31 = vadd.f32 %v2756_v25, %v421_v29  ;;  %2131 = vmatprep.mubr.f32.mxu1 %v690_v24  ;;  %v2848_v52 = vpop.f32.mrb[12].mxu1 }
  0xf2   :  { %2132 = vmatmul.mubr.f32.gmra.mrb[42].mxu1 %v691_v27  ;;  %v693_v38 = vmax.f32 %v427_v28, 0.0  ;;  %v2850_v53 = vpop.f32.mrb[13].mxu1 }
  0xf3   :  { %v692_v36 = vmax.f32 %v422_v31, 0.0  ;;  %v2011_v37 = vpop.f32.mrb[14].mxu0 }
  0xf4   :  { %v437_v39 = vadd.f32 %v2011_v37, %v2756_v25  ;;  %v431_v40 = vpop.f32.mrb[15].mxu0 }
  0xf5   :  { %v432_v42 = vadd.f32 %v2756_v25, %v431_v40  ;;  %2134 = vmatprep.mubr.f32.mxu1 %v692_v36  ;;  %v2854_v61 = vpop.f32.mrb[14].mxu1 }
  0xf6   :  { %2135 = vmatmul.mubr.f32.gmra.mrb[44].mxu1 %v693_v38  ;;  %v695_v47 = vmax.f32 %v437_v39, 0.0  ;;  %v2856_v63 = vpop.f32.mrb[15].mxu1 }
  0xf7   :  { %v694_v45 = vmax.f32 %v432_v42, 0.0  ;;  %v2014_v46 = vpop.f32.mrb[16].mxu0 }
  0xf8   :  { %v447_v48 = vadd.f32 %v2014_v46, %v2756_v25  ;;  %v441_v49 = vpop.f32.mrb[17].mxu0 }
  0xf9   :  { %v442_v50 = vadd.f32 %v2756_v25, %v441_v49  ;;  %2137 = vmatprep.mubr.f32.mxu1 %v694_v45  ;;  %v2860_v7 = vpop.f32.mrb[16].mxu1 }
  0xfa   :  { %2138 = vmatmul.mubr.f32.gmra.mrb[46].mxu1 %v695_v47  ;;  %v697_v57 = vmax.f32 %v447_v48, 0.0  ;;  %v2862_v8 = vpop.f32.mrb[17].mxu1 }
  0xfb   :  { %v696_v55 = vmax.f32 %v442_v50, 0.0  ;;  %v2017_v56 = vpop.f32.mrb[18].mxu0 }
  0xfc   :  { %v457_v58 = vadd.f32 %v2017_v56, %v2756_v25  ;;  %v451_v59 = vpop.f32.mrb[19].mxu0  ;;  %v522_v56 = vadd.f32 %v2756_v25, %v2790_v54  ;;  %v527_v54 = vadd.f32 %v2782_v51, %v2756_v25 }
  0xfd   :  { %v452_v60 = vadd.f32 %v2756_v25, %v451_v59  ;;  %2140 = vmatprep.mubr.f32.mxu1 %v696_v55  ;;  %v2866_v17 = vpop.f32.mrb[18].mxu1 }
  0xfe   :  { %2141 = vmatmul.mubr.f32.gmra.mrb[48].mxu1 %v697_v57  ;;  %v699_v3 = vmax.f32 %v457_v58, 0.0  ;;  %v2868_v18 = vpop.f32.mrb[19].mxu1 }
  0xff   :  { %v698_v0 = vmax.f32 %v452_v60, 0.0  ;;  %v2020_v2 = vpop.f32.mrb[20].mxu0 }
 0x100   :  { %v467_v4 = vadd.f32 %v2020_v2, %v2756_v25  ;;  %v461_v5 = vpop.f32.mrb[21].mxu0 }
 0x101   :  { %v462_v6 = vadd.f32 %v2756_v25, %v461_v5  ;;  %2143 = vmatprep.mubr.f32.mxu1 %v698_v0  ;;  %v2872_v28 = vpop.f32.mrb[20].mxu1  ;;  %v532_v5 = vadd.f32 %v2756_v25, %v2802_v1 }
 0x102   :  { %2144 = vmatmul.mubr.f32.gmra.mrb[50].mxu1 %v699_v3  ;;  %v701_v13 = vmax.f32 %v467_v4, 0.0  ;;  %v2874_v29 = vpop.f32.mrb[21].mxu1  ;;  %v712_v4 = vmax.f32 %v522_v56, 0.0 }
 0x103   :  { %v700_v10 = vmax.f32 %v462_v6, 0.0  ;;  %v2023_v11 = vpop.f32.mrb[22].mxu0 }
 0x104   :  { %v477_v14 = vadd.f32 %v2023_v11, %v2756_v25  ;;  %v471_v15 = vpop.f32.mrb[23].mxu0 }
 0x105   :  { %v472_v16 = vadd.f32 %v2756_v25, %v471_v15  ;;  %2146 = vmatprep.mubr.f32.mxu1 %v700_v10  ;;  %v2878_v38 = vpop.f32.mrb[22].mxu1  ;;  %v713_v15 = vmax.f32 %v527_v54, 0.0 }
 0x106   :  { %2147 = vmatmul.mubr.f32.gmra.mrb[52].mxu1 %v701_v13  ;;  %v703_v22 = vmax.f32 %v477_v14, 0.0  ;;  %v2880_v39 = vpop.f32.mrb[23].mxu1  ;;  %v714_v13 = vmax.f32 %v532_v5, 0.0  ;;  %v542_v14 = vadd.f32 %v2756_v25, %v2814_v12 }
 0x107   :  { %v702_v19 = vmax.f32 %v472_v16, 0.0  ;;  %v2026_v21 = vpop.f32.mrb[24].mxu0  ;;  %v537_v16 = vadd.f32 %v2794_v62, %v2756_v25  ;;  %v562_v62 = vadd.f32 %v2756_v25, %v2838_v35  ;;  %v582_v35 = vadd.f32 %v2756_v25, %v2850_v53 }
 0x108   :  { %v487_v24 = vadd.f32 %v2026_v21, %v2756_v25  ;;  %v481_v26 = vpop.f32.mrb[25].mxu0  ;;  %v716_v51 = vmax.f32 %v542_v14, 0.0  ;;  %v552_v21 = vadd.f32 %v2756_v25, %v2826_v23  ;;  %v572_v23 = vadd.f32 %v2756_v25, %v2844_v44 }
 0x109   :  { %v482_v27 = vadd.f32 %v2756_v25, %v481_v26  ;;  %2149 = vmatprep.mubr.f32.mxu1 %v702_v19  ;;  %v2884_v48 = vpop.f32.mrb[24].mxu1  ;;  %v592_v44 = vadd.f32 %v2756_v25, %v2856_v63  ;;  %v602_v53 = vadd.f32 %v2756_v25, %v2862_v8  ;;  %v612_v63 = vadd.f32 %v2756_v25, %v2868_v18 }
 0x10a   :  { %2150 = vmatmul.mubr.f32.gmra.mrb[54].mxu1 %v703_v22  ;;  %v705_v33 = vmax.f32 %v487_v24, 0.0  ;;  %v2886_v49 = vpop.f32.mrb[25].mxu1  ;;  %v715_v22 = vmax.f32 %v537_v16, 0.0  ;;  %v547_v24 = vadd.f32 %v2806_v9, %v2756_v25  ;;  %v718_v12 = vmax.f32 %v552_v21, 0.0 }
 0x10b   :  { %v704_v30 = vmax.f32 %v482_v27, 0.0  ;;  %v2029_v31 = vpop.f32.mrb[26].mxu0  ;;  %v557_v27 = vadd.f32 %v2818_v20, %v2756_v25  ;;  %v567_v9 = vadd.f32 %v2830_v32, %v2756_v25  ;;  %v577_v20 = vadd.f32 %v2842_v43, %v2756_v25 }
 0x10c   :  { %v497_v34 = vadd.f32 %v2029_v31, %v2756_v25  ;;  %v491_v36 = vpop.f32.mrb[27].mxu0  ;;  %v717_v26 = vmax.f32 %v547_v24, 0.0  ;;  %v587_v32 = vadd.f32 %v2848_v52, %v2756_v25  ;;  %v597_v43 = vadd.f32 %v2854_v61, %v2756_v25 }
 0x10d   :  { %v492_v37 = vadd.f32 %v2756_v25, %v491_v36  ;;  %2152 = vmatprep.mubr.f32.mxu1 %v704_v30  ;;  %v2892_v0 = vpop.f32.mrb[26].mxu1  ;;  %v720_v30 = vmax.f32 %v562_v62, 0.0  ;;  %v719_v31 = vmax.f32 %v557_v27, 0.0  ;;  %v724_v36 = vmax.f32 %v582_v35, 0.0 }
 0x10e   :  { %2153 = vmatmul.mubr.f32.gmra.mrb[56].mxu1 %v705_v33  ;;  %v707_v42 = vmax.f32 %v497_v34, 0.0  ;;  %v2894_v2 = vpop.f32.mrb[27].mxu1  ;;  %v722_v33 = vmax.f32 %v572_v23, 0.0  ;;  %v721_v34 = vmax.f32 %v567_v9, 0.0  ;;  %v607_v52 = vadd.f32 %v2860_v7, %v2756_v25 }
 0x10f   :  { %v706_v40 = vmax.f32 %v492_v37, 0.0  ;;  %v2032_v41 = vpop.f32.mrb[28].mxu0  ;;  %v723_v37 = vmax.f32 %v577_v20, 0.0  ;;  %v622_v8 = vadd.f32 %v2756_v25, %v2874_v29  ;;  %v617_v61 = vadd.f32 %v2866_v17, %v2756_v25 }
 0x110   :  { %v507_v45 = vadd.f32 %v2032_v41, %v2756_v25  ;;  %v501_v46 = vpop.f32.mrb[29].mxu0  ;;  %v725_v41 = vmax.f32 %v587_v32, 0.0  ;;  %v632_v18 = vadd.f32 %v2756_v25, %v2880_v39  ;;  %v627_v7 = vadd.f32 %v2872_v28, %v2756_v25 }
 0x111   :  { %v502_v47 = vadd.f32 %v2756_v25, %v501_v46  ;;  %2155 = vmatprep.mubr.f32.mxu1 %v706_v40  ;;  %v2900_v10 = vpop.f32.mrb[28].mxu1  ;;  %v726_v40 = vmax.f32 %v592_v44, 0.0  ;;  %v730_v46 = vmax.f32 %v612_v63, 0.0  ;;  %v642_v29 = vadd.f32 %v2756_v25, %v2886_v49 }
 0x112   :  { %2156 = vmatmul.mubr.f32.gmra.mrb[58].mxu1 %v707_v42  ;;  %v709_v57 = vmax.f32 %v507_v45, 0.0  ;;  %v2902_v11 = vpop.f32.mrb[29].mxu1  ;;  %v728_v42 = vmax.f32 %v602_v53, 0.0  ;;  %v727_v45 = vmax.f32 %v597_v43, 0.0  ;;  %v734_v56 = vmax.f32 %v632_v18, 0.0 }
 0x113   :  { %v708_v50 = vmax.f32 %v502_v47, 0.0  ;;  %v2035_v55 = vpop.f32.mrb[30].mxu0  ;;  %v729_v47 = vmax.f32 %v607_v52, 0.0  ;;  %v637_v17 = vadd.f32 %v2878_v38, %v2756_v25  ;;  %v652_v39 = vadd.f32 %v2756_v25, %v2894_v2 }
 0x114   :  { %v517_v58 = vadd.f32 %v2035_v55, %v2756_v25  ;;  %v511_v59 = vpop.f32.mrb[31].mxu0  ;;  %v731_v55 = vmax.f32 %v617_v61, 0.0  ;;  %v647_v28 = vadd.f32 %v2884_v48, %v2756_v25  ;;  %v662_v49 = vadd.f32 %v2756_v25, %v2902_v11 }
 0x115   :  { %v512_v60 = vadd.f32 %v2756_v25, %v511_v59  ;;  %2158 = vmatprep.mubr.f32.mxu1 %v708_v50  ;;  %v2908_v1 = vpop.f32.mrb[30].mxu1  ;;  %v732_v50 = vmax.f32 %v622_v8, 0.0  ;;  %v735_v59 = vmax.f32 %v637_v17, 0.0  ;;  %v657_v38 = vadd.f32 %v2892_v0, %v2756_v25 }
 0x116   :  { %2159 = vmatmul.mubr.f32.gmra.mrb[60].mxu1 %v709_v57  ;;  %v711_v6 = vmax.f32 %v517_v58, 0.0  ;;  %v2910_v19 = vpop.f32.mrb[31].mxu1  ;;  %v733_v57 = vmax.f32 %v627_v7, 0.0  ;;  %v736_v58 = vmax.f32 %v642_v29, 0.0  ;;  %v667_v48 = vadd.f32 %v2900_v10, %v2756_v25 }
 0x117   :  { %v710_v3 = vmax.f32 %v512_v60, 0.0  ;;  %v738_v60 = vmax.f32 %v652_v39, 0.0  ;;  %v672_v2 = vadd.f32 %v2756_v25, %v2910_v19  ;;  %v739_v5 = vmax.f32 %v657_v38, 0.0 }
 0x118   :  { %v741_v54 = vmax.f32 %v667_v48, 0.0  ;;  %v677_v11 = vadd.f32 %v2908_v1, %v2756_v25 }
 0x119   :  { %2161 = vmatprep.mubr.f32.mxu1 %v710_v3  ;;  %v737_v3 = vmax.f32 %v647_v28, 0.0 }
 0x11a   :  { %2162 = vmatmul.mubr.f32.gmra.mrb[62].mxu1 %v711_v6  ;;  %v742_v6 = vmax.f32 %v672_v2, 0.0  ;;  %v743_v0 = vmax.f32 %v677_v11, 0.0 }
 0x11b   :  { %2164 = vmatprep.mubr.f32.mxu1 %v712_v4  ;;  %v740_v4 = vmax.f32 %v662_v49, 0.0 }
 0x11e   :  { %2165 = vmatmul.mubr.f32.gmra.mrb[64].mxu1 %v713_v15 }
 0x11f   :  { %2167 = vmatprep.mubr.f32.mxu1 %v714_v13  ;;  %v2969_v13 = vld [vmem:[%s3365_s4] ss:$0 sm:$0xff] }
 0x122   :  { %2168 = vmatmul.mubr.f32.gmra.mrb[66].mxu1 %v715_v22 }
 0x123   :  { %2170 = vmatprep.mubr.f32.mxu1 %v716_v51 }
 0x126   :  { %2171 = vmatmul.mubr.f32.gmra.mrb[68].mxu1 %v717_v26 }
 0x127   :  { %2173 = vmatprep.mubr.f32.mxu1 %v718_v12 }
 0x12a   :  { %2174 = vmatmul.mubr.f32.gmra.mrb[70].mxu1 %v719_v31 }
 0x12b   :  { %2176 = vmatprep.mubr.f32.mxu1 %v720_v30 }
 0x12e   :  { %2177 = vmatmul.mubr.f32.gmra.mrb[72].mxu1 %v721_v34 }
 0x12f   :  { %2179 = vmatprep.mubr.f32.mxu1 %v722_v33 }
 0x132   :  { %2180 = vmatmul.mubr.f32.gmra.mrb[74].mxu1 %v723_v37 }
 0x133   :  { %2182 = vmatprep.mubr.f32.mxu1 %v724_v36 }
 0x136   :  { %2183 = vmatmul.mubr.f32.gmra.mrb[76].mxu1 %v725_v41 }
 0x137   :  { %2185 = vmatprep.mubr.f32.mxu1 %v726_v40 }
 0x13a   :  { %2186 = vmatmul.mubr.f32.gmra.mrb[78].mxu1 %v727_v45 }
 0x13b   :  { %2188 = vmatprep.mubr.f32.mxu1 %v728_v42 }
 0x13e   :  { %2189 = vmatmul.mubr.f32.gmra.mrb[80].mxu1 %v729_v47 }
 0x13f   :  { %2191 = vmatprep.mubr.f32.mxu1 %v730_v46 }
 0x142   :  { %2192 = vmatmul.mubr.f32.gmra.mrb[82].mxu1 %v731_v55 }
 0x143   :  { %2194 = vmatprep.mubr.f32.mxu1 %v732_v50 }
 0x146   :  { %2195 = vmatmul.mubr.f32.gmra.mrb[84].mxu1 %v733_v57 }
 0x147   :  { %2197 = vmatprep.mubr.f32.mxu1 %v734_v56 }
 0x14a   :  { %2198 = vmatmul.mubr.f32.gmra.mrb[86].mxu1 %v735_v59 }
 0x14b   :  { %2200 = vmatprep.mubr.f32.mxu1 %v736_v58 }
 0x14e   :  { %2201 = vmatmul.mubr.f32.gmra.mrb[88].mxu1 %v737_v3 }
 0x14f   :  { %2203 = vmatprep.mubr.f32.mxu1 %v738_v60 }
 0x152   :  { %2204 = vmatmul.mubr.f32.gmra.mrb[90].mxu1 %v739_v5 }
 0x153   :  { %2206 = vmatprep.mubr.f32.mxu1 %v740_v4 }
 0x156   :  { %2207 = vmatmul.mubr.f32.gmra.mrb[92].mxu1 %v741_v54 }
 0x157   :  { %2209 = vmatprep.mubr.f32.mxu1 %v742_v6 }
 0x15a   :  { %2210 = vmatmul.mubr.f32.gmra.mrb[94].mxu1 %v743_v0 }
 0x1b1   :  { %v2118_v14 = vpop.f32.mrb[32].mxu1 }
 0x1b2   :  { %v839_v15 = vadd.f32 %v2118_v14, %v2969_v13  ;;  %v833_v10 = vpop.f32.mrb[33].mxu1 }
 0x1b3   :  { %v834_v16 = vadd.f32 %v2969_v13, %v833_v10 }
 0x1b4   :  { %v1153_v21 = vmax.f32 %v839_v15, 0.0 }
 0x1b5   :  { %v1152_v19 = vmax.f32 %v834_v16, 0.0  ;;  %v2121_v51 = vpop.f32.mrb[34].mxu1 }
 0x1b6   :  { %v849_v25 = vadd.f32 %v2121_v51, %v2969_v13  ;;  %v843_v1 = vpop.f32.mrb[35].mxu1 }
 0x1b7   :  { %v844_v22 = vadd.f32 %v2969_v13, %v843_v1  ;;  %2244 = vmatprep.mubr.f32.mxu0 %v1152_v19 }
 0x1b8   :  { %2245 = vmatmul.mubr.f32.vlgmr.msra.gmra.mrb[32].mxu0 %v1153_v21  ;;  %v1155_v62 = vmax.f32 %v849_v25, 0.0 }
 0x1b9   :  { %v1154_v24 = vmax.f32 %v844_v22, 0.0  ;;  %v2124_v12 = vpop.f32.mrb[36].mxu1 }
 0x1ba   :  { %v859_v26 = vadd.f32 %v2124_v12, %v2969_v13  ;;  %v853_v27 = vpop.f32.mrb[37].mxu1 }
 0x1bb   :  { %v854_v30 = vadd.f32 %v2969_v13, %v853_v27  ;;  %2247 = vmatprep.mubr.f32.mxu0 %v1154_v24 }
 0x1bc   :  { %2248 = vmatmul.mubr.f32.gmra.mrb[34].mxu0 %v1155_v62  ;;  %v1157_v9 = vmax.f32 %v859_v26, 0.0 }
 0x1bd   :  { %v1156_v23 = vmax.f32 %v854_v30, 0.0  ;;  %v2127_v31 = vpop.f32.mrb[38].mxu1 }
 0x1be   :  { %v869_v33 = vadd.f32 %v2127_v31, %v2969_v13  ;;  %v863_v35 = vpop.f32.mrb[39].mxu1 }
 0x1bf   :  { %v864_v34 = vadd.f32 %v2969_v13, %v863_v35  ;;  %2250 = vmatprep.mubr.f32.mxu0 %v1156_v23 }
 0x1c0   :  { %2251 = vmatmul.mubr.f32.gmra.mrb[36].mxu0 %v1157_v9  ;;  %v1159_v44 = vmax.f32 %v869_v33, 0.0 }
 0x1c1   :  { %v1158_v20 = vmax.f32 %v864_v34, 0.0  ;;  %v2130_v36 = vpop.f32.mrb[40].mxu1 }
 0x1c2   :  { %v879_v37 = vadd.f32 %v2130_v36, %v2969_v13  ;;  %v873_v32 = vpop.f32.mrb[41].mxu1 }
 0x1c3   :  { %v874_v40 = vadd.f32 %v2969_v13, %v873_v32  ;;  %2253 = vmatprep.mubr.f32.mxu0 %v1158_v20 }
 0x1c4   :  { %2254 = vmatmul.mubr.f32.gmra.mrb[38].mxu0 %v1159_v44  ;;  %v1161_v43 = vmax.f32 %v879_v37, 0.0 }
 0x1c5   :  { %v1160_v53 = vmax.f32 %v874_v40, 0.0  ;;  %v2133_v41 = vpop.f32.mrb[42].mxu1 }
 0x1c6   :  { %v889_v42 = vadd.f32 %v2133_v41, %v2969_v13  ;;  %v883_v63 = vpop.f32.mrb[43].mxu1 }
 0x1c7   :  { %v884_v45 = vadd.f32 %v2969_v13, %v883_v63  ;;  %2256 = vmatprep.mubr.f32.mxu0 %v1160_v53 }
 0x1c8   :  { %2257 = vmatmul.mubr.f32.gmra.mrb[40].mxu0 %v1161_v43  ;;  %v1163_v8 = vmax.f32 %v889_v42, 0.0 }
 0x1c9   :  { %v1162_v52 = vmax.f32 %v884_v45, 0.0  ;;  %v2136_v46 = vpop.f32.mrb[44].mxu1 }
 0x1ca   :  { %v899_v47 = vadd.f32 %v2136_v46, %v2969_v13  ;;  %v893_v61 = vpop.f32.mrb[45].mxu1 }
 0x1cb   :  { %v894_v50 = vadd.f32 %v2969_v13, %v893_v61  ;;  %2259 = vmatprep.mubr.f32.mxu0 %v1162_v52 }
 0x1cc   :  { %2260 = vmatmul.mubr.f32.gmra.mrb[42].mxu0 %v1163_v8  ;;  %v1165_v7 = vmax.f32 %v899_v47, 0.0 }
 0x1cd   :  { %v1164_v18 = vmax.f32 %v894_v50, 0.0  ;;  %v2139_v55 = vpop.f32.mrb[46].mxu1 }
 0x1ce   :  { %v909_v56 = vadd.f32 %v2139_v55, %v2969_v13  ;;  %v903_v29 = vpop.f32.mrb[47].mxu1 }
 0x1cf   :  { %v904_v57 = vadd.f32 %v2969_v13, %v903_v29  ;;  %2262 = vmatprep.mubr.f32.mxu0 %v1164_v18 }
 0x1d0   :  { %2263 = vmatmul.mubr.f32.gmra.mrb[44].mxu0 %v1165_v7  ;;  %v1167_v39 = vmax.f32 %v909_v56, 0.0 }
 0x1d1   :  { %v1166_v17 = vmax.f32 %v904_v57, 0.0  ;;  %v2142_v58 = vpop.f32.mrb[48].mxu1 }
 0x1d2   :  { %v919_v59 = vadd.f32 %v2142_v58, %v2969_v13  ;;  %v913_v28 = vpop.f32.mrb[49].mxu1 }
 0x1d3   :  { %v914_v60 = vadd.f32 %v2969_v13, %v913_v28  ;;  %2265 = vmatprep.mubr.f32.mxu0 %v1166_v17 }
 0x1d4   :  { %2266 = vmatmul.mubr.f32.gmra.mrb[46].mxu0 %v1167_v39  ;;  %v1169_v38 = vmax.f32 %v919_v59, 0.0 }
 0x1d5   :  { %v1168_v49 = vmax.f32 %v914_v60, 0.0  ;;  %v2145_v3 = vpop.f32.mrb[50].mxu1 }
 0x1d6   :  { %v929_v4 = vadd.f32 %v2145_v3, %v2969_v13  ;;  %v923_v2 = vpop.f32.mrb[51].mxu1 }
 0x1d7   :  { %v924_v5 = vadd.f32 %v2969_v13, %v923_v2  ;;  %2268 = vmatprep.mubr.f32.mxu0 %v1168_v49 }
 0x1d8   :  { %2269 = vmatmul.mubr.f32.gmra.mrb[48].mxu0 %v1169_v38  ;;  %v1171_v54 = vmax.f32 %v929_v4, 0.0 }
 0x1d9   :  { %v1170_v48 = vmax.f32 %v924_v5, 0.0  ;;  %v2148_v6 = vpop.f32.mrb[52].mxu1 }
 0x1da   :  { %v939_v11 = vadd.f32 %v2148_v6, %v2969_v13  ;;  %v933_v0 = vpop.f32.mrb[53].mxu1 }
 0x1db   :  { %v934_v14 = vadd.f32 %v2969_v13, %v933_v0  ;;  %2271 = vmatprep.mubr.f32.mxu0 %v1170_v48 }
 0x1dc   :  { %2272 = vmatmul.mubr.f32.gmra.mrb[50].mxu0 %v1171_v54  ;;  %v1173_v16 = vmax.f32 %v939_v11, 0.0 }
 0x1dd   :  { %v1172_v15 = vmax.f32 %v934_v14, 0.0  ;;  %v2151_v10 = vpop.f32.mrb[54].mxu1 }
 0x1de   :  { %v949_v19 = vadd.f32 %v2151_v10, %v2969_v13  ;;  %v943_v51 = vpop.f32.mrb[55].mxu1 }
 0x1df   :  { %v944_v21 = vadd.f32 %v2969_v13, %v943_v51  ;;  %2274 = vmatprep.mubr.f32.mxu0 %v1172_v15 }
 0x1e0   :  { %2275 = vmatmul.mubr.f32.gmra.mrb[52].mxu0 %v1173_v16  ;;  %v1175_v22 = vmax.f32 %v949_v19, 0.0 }
 0x1e1   :  { %v1174_v25 = vmax.f32 %v944_v21, 0.0  ;;  %v2154_v1 = vpop.f32.mrb[56].mxu1 }
 0x1e2   :  { %v959_v24 = vadd.f32 %v2154_v1, %v2969_v13  ;;  %v953_v12 = vpop.f32.mrb[57].mxu1 }
 0x1e3   :  { %v954_v62 = vadd.f32 %v2969_v13, %v953_v12  ;;  %2277 = vmatprep.mubr.f32.mxu0 %v1174_v25 }
 0x1e4   :  { %2278 = vmatmul.mubr.f32.gmra.mrb[54].mxu0 %v1175_v22  ;;  %v1177_v30 = vmax.f32 %v959_v24, 0.0 }
 0x1e5   :  { %v1176_v26 = vmax.f32 %v954_v62, 0.0  ;;  %v2157_v27 = vpop.f32.mrb[58].mxu1 }
 0x1e6   :  { %v969_v23 = vadd.f32 %v2157_v27, %v2969_v13  ;;  %v963_v31 = vpop.f32.mrb[59].mxu1 }
 0x1e7   :  { %v964_v9 = vadd.f32 %v2969_v13, %v963_v31  ;;  %2280 = vmatprep.mubr.f32.mxu0 %v1176_v26 }
 0x1e8   :  { %2281 = vmatmul.mubr.f32.gmra.mrb[56].mxu0 %v1177_v30  ;;  %v1179_v34 = vmax.f32 %v969_v23, 0.0 }
 0x1e9   :  { %v1178_v33 = vmax.f32 %v964_v9, 0.0  ;;  %v2160_v35 = vpop.f32.mrb[60].mxu1 }
 0x1ea   :  { %v979_v20 = vadd.f32 %v2160_v35, %v2969_v13  ;;  %v973_v36 = vpop.f32.mrb[61].mxu1 }
 0x1eb   :  { %v974_v44 = vadd.f32 %v2969_v13, %v973_v36  ;;  %2283 = vmatprep.mubr.f32.mxu0 %v1178_v33 }
 0x1ec   :  { %2284 = vmatmul.mubr.f32.gmra.mrb[58].mxu0 %v1179_v34  ;;  %v1181_v40 = vmax.f32 %v979_v20, 0.0 }
 0x1ed   :  { %v1180_v37 = vmax.f32 %v974_v44, 0.0  ;;  %v2163_v32 = vpop.f32.mrb[62].mxu1 }
 0x1ee   :  { %v989_v53 = vadd.f32 %v2163_v32, %v2969_v13  ;;  %v983_v41 = vpop.f32.mrb[63].mxu1 }
 0x1ef   :  { %v984_v43 = vadd.f32 %v2969_v13, %v983_v41  ;;  %2286 = vmatprep.mubr.f32.mxu0 %v1180_v37 }
 0x1f0   :  { %2287 = vmatmul.mubr.f32.gmra.mrb[60].mxu0 %v1181_v40  ;;  %v1183_v45 = vmax.f32 %v989_v53, 0.0 }
 0x1f1   :  { %v1182_v42 = vmax.f32 %v984_v43, 0.0  ;;  %v2166_v63 = vpop.f32.mrb[64].mxu1 }
 0x1f2   :  { %v999_v52 = vadd.f32 %v2166_v63, %v2969_v13  ;;  %v993_v46 = vpop.f32.mrb[65].mxu1 }
 0x1f3   :  { %v994_v8 = vadd.f32 %v2969_v13, %v993_v46  ;;  %2289 = vmatprep.mubr.f32.mxu0 %v1182_v42 }
 0x1f4   :  { %2290 = vmatmul.mubr.f32.gmra.mrb[62].mxu0 %v1183_v45  ;;  %v1185_v50 = vmax.f32 %v999_v52, 0.0 }
 0x1f5   :  { %v1184_v47 = vmax.f32 %v994_v8, 0.0  ;;  %v2169_v61 = vpop.f32.mrb[66].mxu1 }
 0x1f6   :  { %v1009_v18 = vadd.f32 %v2169_v61, %v2969_v13  ;;  %v1003_v55 = vpop.f32.mrb[67].mxu1 }
 0x1f7   :  { %v1004_v7 = vadd.f32 %v2969_v13, %v1003_v55  ;;  %2292 = vmatprep.mubr.f32.mxu0 %v1184_v47 }
 0x1f8   :  { %2293 = vmatmul.mubr.f32.gmra.mrb[64].mxu0 %v1185_v50  ;;  %v1187_v57 = vmax.f32 %v1009_v18, 0.0 }
 0x1f9   :  { %v1186_v56 = vmax.f32 %v1004_v7, 0.0  ;;  %v2172_v29 = vpop.f32.mrb[68].mxu1 }
 0x1fa   :  { %v1019_v17 = vadd.f32 %v2172_v29, %v2969_v13  ;;  %v1013_v58 = vpop.f32.mrb[69].mxu1 }
 0x1fb   :  { %v1014_v39 = vadd.f32 %v2969_v13, %v1013_v58  ;;  %2295 = vmatprep.mubr.f32.mxu0 %v1186_v56 }
 0x1fc   :  { %2296 = vmatmul.mubr.f32.gmra.mrb[66].mxu0 %v1187_v57  ;;  %v1189_v60 = vmax.f32 %v1019_v17, 0.0 }
 0x1fd   :  { %v1188_v59 = vmax.f32 %v1014_v39, 0.0  ;;  %v2175_v28 = vpop.f32.mrb[70].mxu1 }
 0x1fe   :  { %v1029_v49 = vadd.f32 %v2175_v28, %v2969_v13  ;;  %v1023_v3 = vpop.f32.mrb[71].mxu1 }
 0x1ff   :  { %v1024_v38 = vadd.f32 %v2969_v13, %v1023_v3  ;;  %2298 = vmatprep.mubr.f32.mxu0 %v1188_v59 }
 0x200   :  { %2299 = vmatmul.mubr.f32.gmra.mrb[68].mxu0 %v1189_v60  ;;  %v1191_v5 = vmax.f32 %v1029_v49, 0.0 }
 0x201   :  { %v1190_v4 = vmax.f32 %v1024_v38, 0.0  ;;  %v2178_v2 = vpop.f32.mrb[72].mxu1 }
 0x202   :  { %v1039_v48 = vadd.f32 %v2178_v2, %v2969_v13  ;;  %v1033_v6 = vpop.f32.mrb[73].mxu1 }
 0x203   :  { %v1034_v54 = vadd.f32 %v2969_v13, %v1033_v6  ;;  %2301 = vmatprep.mubr.f32.mxu0 %v1190_v4 }
 0x204   :  { %2302 = vmatmul.mubr.f32.gmra.mrb[70].mxu0 %v1191_v5  ;;  %v1193_v14 = vmax.f32 %v1039_v48, 0.0 }
 0x205   :  { %v1192_v11 = vmax.f32 %v1034_v54, 0.0  ;;  %v2181_v0 = vpop.f32.mrb[74].mxu1 }
 0x206   :  { %v1049_v15 = vadd.f32 %v2181_v0, %v2969_v13  ;;  %v1043_v10 = vpop.f32.mrb[75].mxu1 }
 0x207   :  { %v1044_v16 = vadd.f32 %v2969_v13, %v1043_v10  ;;  %2304 = vmatprep.mubr.f32.mxu0 %v1192_v11 }
 0x208   :  { %2305 = vmatmul.mubr.f32.gmra.mrb[72].mxu0 %v1193_v14  ;;  %v1195_v21 = vmax.f32 %v1049_v15, 0.0 }
 0x209   :  { %v1194_v19 = vmax.f32 %v1044_v16, 0.0  ;;  %v2184_v51 = vpop.f32.mrb[76].mxu1  ;;  %v3038_v16 = vld [vmem:[%s3366_s6] ss:$0 sm:$0xff] }
 0x20a   :  { %v1059_v25 = vadd.f32 %v2184_v51, %v2969_v13  ;;  %v1053_v1 = vpop.f32.mrb[77].mxu1 }
 0x20b   :  { %v1054_v22 = vadd.f32 %v2969_v13, %v1053_v1  ;;  %2307 = vmatprep.mubr.f32.mxu0 %v1194_v19 }
 0x20c   :  { %2308 = vmatmul.mubr.f32.gmra.mrb[74].mxu0 %v1195_v21  ;;  %v1197_v62 = vmax.f32 %v1059_v25, 0.0 }
 0x20d   :  { %v1196_v24 = vmax.f32 %v1054_v22, 0.0  ;;  %v2187_v12 = vpop.f32.mrb[78].mxu1 }
 0x20e   :  { %v1069_v26 = vadd.f32 %v2187_v12, %v2969_v13  ;;  %v1063_v27 = vpop.f32.mrb[79].mxu1 }
 0x20f   :  { %v1064_v30 = vadd.f32 %v2969_v13, %v1063_v27  ;;  %2310 = vmatprep.mubr.f32.mxu0 %v1196_v24 }
 0x210   :  { %2311 = vmatmul.mubr.f32.gmra.mrb[76].mxu0 %v1197_v62  ;;  %v1199_v9 = vmax.f32 %v1069_v26, 0.0 }
 0x211   :  { %v1198_v23 = vmax.f32 %v1064_v30, 0.0  ;;  %v2190_v31 = vpop.f32.mrb[80].mxu1 }
 0x212   :  { %v1079_v33 = vadd.f32 %v2190_v31, %v2969_v13  ;;  %v1073_v35 = vpop.f32.mrb[81].mxu1 }
 0x213   :  { %v1074_v34 = vadd.f32 %v2969_v13, %v1073_v35  ;;  %2313 = vmatprep.mubr.f32.mxu0 %v1198_v23 }
 0x214   :  { %2314 = vmatmul.mubr.f32.gmra.mrb[78].mxu0 %v1199_v9  ;;  %v1201_v44 = vmax.f32 %v1079_v33, 0.0 }
 0x215   :  { %v1200_v20 = vmax.f32 %v1074_v34, 0.0  ;;  %v2193_v36 = vpop.f32.mrb[82].mxu1 }
 0x216   :  { %v1089_v37 = vadd.f32 %v2193_v36, %v2969_v13  ;;  %v1083_v32 = vpop.f32.mrb[83].mxu1 }
 0x217   :  { %v1084_v40 = vadd.f32 %v2969_v13, %v1083_v32  ;;  %2316 = vmatprep.mubr.f32.mxu0 %v1200_v20 }
 0x218   :  { %2317 = vmatmul.mubr.f32.gmra.mrb[80].mxu0 %v1201_v44  ;;  %v1203_v43 = vmax.f32 %v1089_v37, 0.0 }
 0x219   :  { %v1202_v53 = vmax.f32 %v1084_v40, 0.0  ;;  %v2196_v41 = vpop.f32.mrb[84].mxu1 }
 0x21a   :  { %v1099_v42 = vadd.f32 %v2196_v41, %v2969_v13  ;;  %v1093_v63 = vpop.f32.mrb[85].mxu1 }
 0x21b   :  { %v1094_v45 = vadd.f32 %v2969_v13, %v1093_v63  ;;  %2319 = vmatprep.mubr.f32.mxu0 %v1202_v53 }
 0x21c   :  { %2320 = vmatmul.mubr.f32.gmra.mrb[82].mxu0 %v1203_v43  ;;  %v1205_v8 = vmax.f32 %v1099_v42, 0.0 }
 0x21d   :  { %v1204_v52 = vmax.f32 %v1094_v45, 0.0  ;;  %v2199_v46 = vpop.f32.mrb[86].mxu1 }
 0x21e   :  { %v1109_v47 = vadd.f32 %v2199_v46, %v2969_v13  ;;  %v1103_v61 = vpop.f32.mrb[87].mxu1 }
 0x21f   :  { %v1104_v50 = vadd.f32 %v2969_v13, %v1103_v61  ;;  %2322 = vmatprep.mubr.f32.mxu0 %v1204_v52 }
 0x220   :  { %2323 = vmatmul.mubr.f32.gmra.mrb[84].mxu0 %v1205_v8  ;;  %v1207_v7 = vmax.f32 %v1109_v47, 0.0 }
 0x221   :  { %v1206_v18 = vmax.f32 %v1104_v50, 0.0  ;;  %v2202_v55 = vpop.f32.mrb[88].mxu1 }
 0x222   :  { %v1119_v56 = vadd.f32 %v2202_v55, %v2969_v13  ;;  %v1113_v29 = vpop.f32.mrb[89].mxu1 }
 0x223   :  { %v1114_v57 = vadd.f32 %v2969_v13, %v1113_v29  ;;  %2325 = vmatprep.mubr.f32.mxu0 %v1206_v18 }
 0x224   :  { %2326 = vmatmul.mubr.f32.gmra.mrb[86].mxu0 %v1207_v7  ;;  %v1209_v39 = vmax.f32 %v1119_v56, 0.0 }
 0x225   :  { %v1208_v17 = vmax.f32 %v1114_v57, 0.0  ;;  %v2205_v58 = vpop.f32.mrb[90].mxu1 }
 0x226   :  { %v1129_v59 = vadd.f32 %v2205_v58, %v2969_v13  ;;  %v1123_v28 = vpop.f32.mrb[91].mxu1 }
 0x227   :  { %v1124_v60 = vadd.f32 %v2969_v13, %v1123_v28  ;;  %2328 = vmatprep.mubr.f32.mxu0 %v1208_v17 }
 0x228   :  { %2329 = vmatmul.mubr.f32.gmra.mrb[88].mxu0 %v1209_v39  ;;  %v1211_v38 = vmax.f32 %v1129_v59, 0.0 }
 0x229   :  { %v1210_v49 = vmax.f32 %v1124_v60, 0.0  ;;  %v2208_v3 = vpop.f32.mrb[92].mxu1 }
 0x22a   :  { %v1139_v4 = vadd.f32 %v2208_v3, %v2969_v13  ;;  %v1133_v2 = vpop.f32.mrb[93].mxu1 }
 0x22b   :  { %v1134_v5 = vadd.f32 %v2969_v13, %v1133_v2  ;;  %2331 = vmatprep.mubr.f32.mxu0 %v1210_v49 }
 0x22c   :  { %2332 = vmatmul.mubr.f32.gmra.mrb[90].mxu0 %v1211_v38  ;;  %v1213_v54 = vmax.f32 %v1139_v4, 0.0 }
 0x22d   :  { %v1212_v48 = vmax.f32 %v1134_v5, 0.0  ;;  %v2211_v6 = vpop.f32.mrb[94].mxu1 }
 0x22e   :  { %v1149_v11 = vadd.f32 %v2211_v6, %v2969_v13  ;;  %v1143_v0 = vpop.f32.mrb[95].mxu1 }
 0x22f   :  { %v1144_v14 = vadd.f32 %v2969_v13, %v1143_v0  ;;  %2334 = vmatprep.mubr.f32.mxu0 %v1212_v48 }
 0x230   :  { %2335 = vmatmul.mubr.f32.gmra.mrb[92].mxu0 %v1213_v54  ;;  %v1215_v10 = vmax.f32 %v1149_v11, 0.0 }
 0x231   :  { %v1214_v15 = vmax.f32 %v1144_v14, 0.0 }
 0x233   :  { %2337 = vmatprep.mubr.f32.mxu0 %v1214_v15 }
 0x234   :  { %2338 = vmatmul.mubr.f32.gmra.mrb[94].mxu0 %v1215_v10 }
 0x28b   :  { %v2246_v19 = vpop.f32.mrb[32].mxu0 }
 0x28c   :  { %v1311_v51 = vadd.f32 %v2246_v19, %v3038_v16  ;;  %v1305_v21 = vpop.f32.mrb[33].mxu0 }
 0x28d   :  { %v1306_v25 = vadd.f32 %v3038_v16, %v1305_v21 }
 0x28e   :  { %1626 = vst.msk [vmem:[%s3367_s7 + $0x8] sm:$0xff] %vm1624_vm2, %v1311_v51 }
 0x28f   :  { %1625 = vst.msk [vmem:[%s3367_s7] sm:$0xff] %vm1624_vm2, %v1306_v25  ;;  %v2249_v13 = vpop.f32.mrb[34].mxu0 }
 0x290   :  { %v1321_v1 = vadd.f32 %v2249_v13, %v3038_v16  ;;  %v1315_v22 = vpop.f32.mrb[35].mxu0 }
 0x291   :  { %v1316_v24 = vadd.f32 %v3038_v16, %v1315_v22 }
 0x292   :  { %1628 = vst.msk [vmem:[%s3367_s7 + $0x18] sm:$0xff] %vm1624_vm2, %v1321_v1 }
 0x293   :  { %1627 = vst.msk [vmem:[%s3367_s7 + $0x10] sm:$0xff] %vm1624_vm2, %v1316_v24  ;;  %v2252_v12 = vpop.f32.mrb[36].mxu0 }
 0x294   :  { %v1331_v62 = vadd.f32 %v2252_v12, %v3038_v16  ;;  %v1325_v26 = vpop.f32.mrb[37].mxu0 }
 0x295   :  { %v1326_v27 = vadd.f32 %v3038_v16, %v1325_v26 }
 0x296   :  { %1630 = vst.msk [vmem:[%s3367_s7 + $0x28] sm:$0xff] %vm1624_vm2, %v1331_v62 }
 0x297   :  { %1629 = vst.msk [vmem:[%s3367_s7 + $0x20] sm:$0xff] %vm1624_vm2, %v1326_v27  ;;  %v2255_v30 = vpop.f32.mrb[38].mxu0 }
 0x298   :  { %v1341_v23 = vadd.f32 %v2255_v30, %v3038_v16  ;;  %v1335_v31 = vpop.f32.mrb[39].mxu0 }
 0x299   :  { %v1336_v9 = vadd.f32 %v3038_v16, %v1335_v31 }
 0x29a   :  { %1632 = vst.msk [vmem:[%s3367_s7 + $0x38] sm:$0xff] %vm1624_vm2, %v1341_v23 }
 0x29b   :  { %1631 = vst.msk [vmem:[%s3367_s7 + $0x30] sm:$0xff] %vm1624_vm2, %v1336_v9  ;;  %v2258_v33 = vpop.f32.mrb[40].mxu0 }
 0x29c   :  { %v1351_v35 = vadd.f32 %v2258_v33, %v3038_v16  ;;  %v1345_v34 = vpop.f32.mrb[41].mxu0 }
 0x29d   :  { %v1346_v20 = vadd.f32 %v3038_v16, %v1345_v34 }
 0x29e   :  { %1634 = vst.msk [vmem:[%s3367_s7 + $0x48] sm:$0xff] %vm1624_vm2, %v1351_v35 }
 0x29f   :  { %1633 = vst.msk [vmem:[%s3367_s7 + $0x40] sm:$0xff] %vm1624_vm2, %v1346_v20  ;;  %v2261_v36 = vpop.f32.mrb[42].mxu0 }
 0x2a0   :  { %v1361_v44 = vadd.f32 %v2261_v36, %v3038_v16  ;;  %v1355_v37 = vpop.f32.mrb[43].mxu0 }
 0x2a1   :  { %v1356_v32 = vadd.f32 %v3038_v16, %v1355_v37 }
 0x2a2   :  { %1636 = vst.msk [vmem:[%s3367_s7 + $0x58] sm:$0xff] %vm1624_vm2, %v1361_v44 }
 0x2a3   :  { %1635 = vst.msk [vmem:[%s3367_s7 + $0x50] sm:$0xff] %vm1624_vm2, %v1356_v32  ;;  %v2264_v40 = vpop.f32.mrb[44].mxu0 }
 0x2a4   :  { %v1371_v53 = vadd.f32 %v2264_v40, %v3038_v16  ;;  %v1365_v41 = vpop.f32.mrb[45].mxu0 }
 0x2a5   :  { %v1366_v43 = vadd.f32 %v3038_v16, %v1365_v41 }
 0x2a6   :  { %1638 = vst.msk [vmem:[%s3367_s7 + $0x68] sm:$0xff] %vm1624_vm2, %v1371_v53 }
 0x2a7   :  { %1637 = vst.msk [vmem:[%s3367_s7 + $0x60] sm:$0xff] %vm1624_vm2, %v1366_v43  ;;  %v2267_v42 = vpop.f32.mrb[46].mxu0 }
 0x2a8   :  { %v1381_v63 = vadd.f32 %v2267_v42, %v3038_v16  ;;  %v1375_v45 = vpop.f32.mrb[47].mxu0 }
 0x2a9   :  { %v1376_v52 = vadd.f32 %v3038_v16, %v1375_v45 }
 0x2aa   :  { %1640 = vst.msk [vmem:[%s3367_s7 + $0x78] sm:$0xff] %vm1624_vm2, %v1381_v63 }
 0x2ab   :  { %1639 = vst.msk [vmem:[%s3367_s7 + $0x70] sm:$0xff] %vm1624_vm2, %v1376_v52  ;;  %v2270_v46 = vpop.f32.mrb[48].mxu0 }
 0x2ac   :  { %v1391_v8 = vadd.f32 %v2270_v46, %v3038_v16  ;;  %v1385_v47 = vpop.f32.mrb[49].mxu0 }
 0x2ad   :  { %v1386_v61 = vadd.f32 %v3038_v16, %v1385_v47 }
 0x2ae   :  { %1642 = vst.msk [vmem:[%s3367_s7 + $0x88] sm:$0xff] %vm1624_vm2, %v1391_v8 }
 0x2af   :  { %1641 = vst.msk [vmem:[%s3367_s7 + $0x80] sm:$0xff] %vm1624_vm2, %v1386_v61  ;;  %v2273_v50 = vpop.f32.mrb[50].mxu0 }
 0x2b0   :  { %v1401_v18 = vadd.f32 %v2273_v50, %v3038_v16  ;;  %v1395_v55 = vpop.f32.mrb[51].mxu0 }
 0x2b1   :  { %v1396_v7 = vadd.f32 %v3038_v16, %v1395_v55 }
 0x2b2   :  { %1644 = vst.msk [vmem:[%s3367_s7 + $0x98] sm:$0xff] %vm1624_vm2, %v1401_v18 }
 0x2b3   :  { %1643 = vst.msk [vmem:[%s3367_s7 + $0x90] sm:$0xff] %vm1624_vm2, %v1396_v7  ;;  %v2276_v56 = vpop.f32.mrb[52].mxu0 }
 0x2b4   :  { %v1411_v29 = vadd.f32 %v2276_v56, %v3038_v16  ;;  %v1405_v57 = vpop.f32.mrb[53].mxu0 }
 0x2b5   :  { %v1406_v17 = vadd.f32 %v3038_v16, %v1405_v57 }
 0x2b6   :  { %1646 = vst.msk [vmem:[%s3367_s7 + $0xa8] sm:$0xff] %vm1624_vm2, %v1411_v29 }
 0x2b7   :  { %1645 = vst.msk [vmem:[%s3367_s7 + $0xa0] sm:$0xff] %vm1624_vm2, %v1406_v17  ;;  %v2279_v58 = vpop.f32.mrb[54].mxu0 }
 0x2b8   :  { %v1421_v39 = vadd.f32 %v2279_v58, %v3038_v16  ;;  %v1415_v59 = vpop.f32.mrb[55].mxu0 }
 0x2b9   :  { %v1416_v28 = vadd.f32 %v3038_v16, %v1415_v59 }
 0x2ba   :  { %1648 = vst.msk [vmem:[%s3367_s7 + $0xb8] sm:$0xff] %vm1624_vm2, %v1421_v39 }
 0x2bb   :  { %1647 = vst.msk [vmem:[%s3367_s7 + $0xb0] sm:$0xff] %vm1624_vm2, %v1416_v28  ;;  %v2282_v60 = vpop.f32.mrb[56].mxu0 }
 0x2bc   :  { %v1431_v49 = vadd.f32 %v2282_v60, %v3038_v16  ;;  %v1425_v3 = vpop.f32.mrb[57].mxu0 }
 0x2bd   :  { %v1426_v38 = vadd.f32 %v3038_v16, %v1425_v3 }
 0x2be   :  { %1650 = vst.msk [vmem:[%s3367_s7 + $0xc8] sm:$0xff] %vm1624_vm2, %v1431_v49 }
 0x2bf   :  { %1649 = vst.msk [vmem:[%s3367_s7 + $0xc0] sm:$0xff] %vm1624_vm2, %v1426_v38  ;;  %v2285_v4 = vpop.f32.mrb[58].mxu0 }
 0x2c0   :  { %v1441_v2 = vadd.f32 %v2285_v4, %v3038_v16  ;;  %v1435_v5 = vpop.f32.mrb[59].mxu0 }
 0x2c1   :  { %v1436_v48 = vadd.f32 %v3038_v16, %v1435_v5 }
 0x2c2   :  { %1652 = vst.msk [vmem:[%s3367_s7 + $0xd8] sm:$0xff] %vm1624_vm2, %v1441_v2 }
 0x2c3   :  { %1651 = vst.msk [vmem:[%s3367_s7 + $0xd0] sm:$0xff] %vm1624_vm2, %v1436_v48  ;;  %v2288_v6 = vpop.f32.mrb[60].mxu0 }
 0x2c4   :  { %v1451_v54 = vadd.f32 %v2288_v6, %v3038_v16  ;;  %v1445_v11 = vpop.f32.mrb[61].mxu0 }
 0x2c5   :  { %v1446_v0 = vadd.f32 %v3038_v16, %v1445_v11 }
 0x2c6   :  { %1654 = vst.msk [vmem:[%s3367_s7 + $0xe8] sm:$0xff] %vm1624_vm2, %v1451_v54 }
 0x2c7   :  { %1653 = vst.msk [vmem:[%s3367_s7 + $0xe0] sm:$0xff] %vm1624_vm2, %v1446_v0  ;;  %v2291_v14 = vpop.f32.mrb[62].mxu0 }
 0x2c8   :  { %v1461_v15 = vadd.f32 %v2291_v14, %v3038_v16  ;;  %v1455_v10 = vpop.f32.mrb[63].mxu0 }
 0x2c9   :  { %v1456_v19 = vadd.f32 %v3038_v16, %v1455_v10 }
 0x2ca   :  { %1656 = vst.msk [vmem:[%s3367_s7 + $0xf8] sm:$0xff] %vm1624_vm2, %v1461_v15 }
 0x2cb   :  { %1655 = vst.msk [vmem:[%s3367_s7 + $0xf0] sm:$0xff] %vm1624_vm2, %v1456_v19  ;;  %v2294_v51 = vpop.f32.mrb[64].mxu0 }
 0x2cc   :  { %v1471_v21 = vadd.f32 %v2294_v51, %v3038_v16  ;;  %v1465_v25 = vpop.f32.mrb[65].mxu0 }
 0x2cd   :  { %v1466_v13 = vadd.f32 %v3038_v16, %v1465_v25 }
 0x2ce   :  { %1658 = vst.msk [vmem:[%s3367_s7 + $0x108] sm:$0xff] %vm1624_vm2, %v1471_v21 }
 0x2cf   :  { %1657 = vst.msk [vmem:[%s3367_s7 + $0x100] sm:$0xff] %vm1624_vm2, %v1466_v13  ;;  %v2297_v1 = vpop.f32.mrb[66].mxu0 }
 0x2d0   :  { %v1481_v22 = vadd.f32 %v2297_v1, %v3038_v16  ;;  %v1475_v24 = vpop.f32.mrb[67].mxu0 }
 0x2d1   :  { %v1476_v12 = vadd.f32 %v3038_v16, %v1475_v24 }
 0x2d2   :  { %1660 = vst.msk [vmem:[%s3367_s7 + $0x118] sm:$0xff] %vm1624_vm2, %v1481_v22 }
 0x2d3   :  { %1659 = vst.msk [vmem:[%s3367_s7 + $0x110] sm:$0xff] %vm1624_vm2, %v1476_v12  ;;  %v2300_v62 = vpop.f32.mrb[68].mxu0 }
 0x2d4   :  { %v1491_v26 = vadd.f32 %v2300_v62, %v3038_v16  ;;  %v1485_v27 = vpop.f32.mrb[69].mxu0 }
 0x2d5   :  { %v1486_v30 = vadd.f32 %v3038_v16, %v1485_v27 }
 0x2d6   :  { %1662 = vst.msk [vmem:[%s3367_s7 + $0x128] sm:$0xff] %vm1624_vm2, %v1491_v26 }
 0x2d7   :  { %1661 = vst.msk [vmem:[%s3367_s7 + $0x120] sm:$0xff] %vm1624_vm2, %v1486_v30  ;;  %v2303_v23 = vpop.f32.mrb[70].mxu0 }
 0x2d8   :  { %v1501_v31 = vadd.f32 %v2303_v23, %v3038_v16  ;;  %v1495_v9 = vpop.f32.mrb[71].mxu0 }
 0x2d9   :  { %v1496_v33 = vadd.f32 %v3038_v16, %v1495_v9 }
 0x2da   :  { %1664 = vst.msk [vmem:[%s3367_s7 + $0x138] sm:$0xff] %vm1624_vm2, %v1501_v31 }
 0x2db   :  { %1663 = vst.msk [vmem:[%s3367_s7 + $0x130] sm:$0xff] %vm1624_vm2, %v1496_v33  ;;  %v2306_v35 = vpop.f32.mrb[72].mxu0 }
 0x2dc   :  { %v1511_v34 = vadd.f32 %v2306_v35, %v3038_v16  ;;  %v1505_v20 = vpop.f32.mrb[73].mxu0 }
 0x2dd   :  { %v1506_v36 = vadd.f32 %v3038_v16, %v1505_v20 }
 0x2de   :  { %1666 = vst.msk [vmem:[%s3367_s7 + $0x148] sm:$0xff] %vm1624_vm2, %v1511_v34 }
 0x2df   :  { %1665 = vst.msk [vmem:[%s3367_s7 + $0x140] sm:$0xff] %vm1624_vm2, %v1506_v36  ;;  %v2309_v44 = vpop.f32.mrb[74].mxu0 }
 0x2e0   :  { %v1521_v37 = vadd.f32 %v2309_v44, %v3038_v16  ;;  %v1515_v32 = vpop.f32.mrb[75].mxu0 }
 0x2e1   :  { %v1516_v40 = vadd.f32 %v3038_v16, %v1515_v32 }
 0x2e2   :  { %1668 = vst.msk [vmem:[%s3367_s7 + $0x158] sm:$0xff] %vm1624_vm2, %v1521_v37 }
 0x2e3   :  { %1667 = vst.msk [vmem:[%s3367_s7 + $0x150] sm:$0xff] %vm1624_vm2, %v1516_v40  ;;  %v2312_v53 = vpop.f32.mrb[76].mxu0 }
 0x2e4   :  { %v1531_v41 = vadd.f32 %v2312_v53, %v3038_v16  ;;  %v1525_v43 = vpop.f32.mrb[77].mxu0 }
 0x2e5   :  { %v1526_v42 = vadd.f32 %v3038_v16, %v1525_v43 }
 0x2e6   :  { %1670 = vst.msk [vmem:[%s3367_s7 + $0x168] sm:$0xff] %vm1624_vm2, %v1531_v41 }
 0x2e7   :  { %1669 = vst.msk [vmem:[%s3367_s7 + $0x160] sm:$0xff] %vm1624_vm2, %v1526_v42  ;;  %v2315_v63 = vpop.f32.mrb[78].mxu0 }
 0x2e8   :  { %v1541_v45 = vadd.f32 %v2315_v63, %v3038_v16  ;;  %v1535_v52 = vpop.f32.mrb[79].mxu0 }
 0x2e9   :  { %v1536_v46 = vadd.f32 %v3038_v16, %v1535_v52 }
 0x2ea   :  { %1672 = vst.msk [vmem:[%s3367_s7 + $0x178] sm:$0xff] %vm1624_vm2, %v1541_v45 }
 0x2eb   :  { %1671 = vst.msk [vmem:[%s3367_s7 + $0x170] sm:$0xff] %vm1624_vm2, %v1536_v46  ;;  %v2318_v8 = vpop.f32.mrb[80].mxu0 }
 0x2ec   :  { %v1551_v47 = vadd.f32 %v2318_v8, %v3038_v16  ;;  %v1545_v61 = vpop.f32.mrb[81].mxu0 }
 0x2ed   :  { %v1546_v50 = vadd.f32 %v3038_v16, %v1545_v61 }
 0x2ee   :  { %1674 = vst.msk [vmem:[%s3367_s7 + $0x188] sm:$0xff] %vm1624_vm2, %v1551_v47 }
 0x2ef   :  { %1673 = vst.msk [vmem:[%s3367_s7 + $0x180] sm:$0xff] %vm1624_vm2, %v1546_v50  ;;  %v2321_v18 = vpop.f32.mrb[82].mxu0 }
 0x2f0   :  { %v1561_v55 = vadd.f32 %v2321_v18, %v3038_v16  ;;  %v1555_v7 = vpop.f32.mrb[83].mxu0 }
 0x2f1   :  { %v1556_v56 = vadd.f32 %v3038_v16, %v1555_v7 }
 0x2f2   :  { %1676 = vst.msk [vmem:[%s3367_s7 + $0x198] sm:$0xff] %vm1624_vm2, %v1561_v55 }
 0x2f3   :  { %1675 = vst.msk [vmem:[%s3367_s7 + $0x190] sm:$0xff] %vm1624_vm2, %v1556_v56  ;;  %v2324_v29 = vpop.f32.mrb[84].mxu0 }
 0x2f4   :  { %v1571_v57 = vadd.f32 %v2324_v29, %v3038_v16  ;;  %v1565_v17 = vpop.f32.mrb[85].mxu0 }
 0x2f5   :  { %v1566_v58 = vadd.f32 %v3038_v16, %v1565_v17 }
 0x2f6   :  { %1678 = vst.msk [vmem:[%s3367_s7 + $0x1a8] sm:$0xff] %vm1624_vm2, %v1571_v57 }
 0x2f7   :  { %1677 = vst.msk [vmem:[%s3367_s7 + $0x1a0] sm:$0xff] %vm1624_vm2, %v1566_v58  ;;  %v2327_v39 = vpop.f32.mrb[86].mxu0 }
 0x2f8   :  { %v1581_v59 = vadd.f32 %v2327_v39, %v3038_v16  ;;  %v1575_v28 = vpop.f32.mrb[87].mxu0 }
 0x2f9   :  { %v1576_v60 = vadd.f32 %v3038_v16, %v1575_v28 }
 0x2fa   :  { %1680 = vst.msk [vmem:[%s3367_s7 + $0x1b8] sm:$0xff] %vm1624_vm2, %v1581_v59 }
 0x2fb   :  { %1679 = vst.msk [vmem:[%s3367_s7 + $0x1b0] sm:$0xff] %vm1624_vm2, %v1576_v60  ;;  %v2330_v49 = vpop.f32.mrb[88].mxu0 }
 0x2fc   :  { %v1591_v3 = vadd.f32 %v2330_v49, %v3038_v16  ;;  %v1585_v38 = vpop.f32.mrb[89].mxu0 }
 0x2fd   :  { %v1586_v4 = vadd.f32 %v3038_v16, %v1585_v38 }
 0x2fe   :  { %1682 = vst.msk [vmem:[%s3367_s7 + $0x1c8] sm:$0xff] %vm1624_vm2, %v1591_v3 }
 0x2ff   :  { %1681 = vst.msk [vmem:[%s3367_s7 + $0x1c0] sm:$0xff] %vm1624_vm2, %v1586_v4  ;;  %v2333_v2 = vpop.f32.mrb[90].mxu0 }
 0x300   :  { %v1601_v5 = vadd.f32 %v2333_v2, %v3038_v16  ;;  %v1595_v48 = vpop.f32.mrb[91].mxu0 }
 0x301   :  { %v1596_v6 = vadd.f32 %v3038_v16, %v1595_v48 }
 0x302   :  { %1684 = vst.msk [vmem:[%s3367_s7 + $0x1d8] sm:$0xff] %vm1624_vm2, %v1601_v5 }
 0x303   :  { %1683 = vst.msk [vmem:[%s3367_s7 + $0x1d0] sm:$0xff] %vm1624_vm2, %v1596_v6  ;;  %v2336_v54 = vpop.f32.mrb[92].mxu0 }
 0x304   :  { %v1611_v11 = vadd.f32 %v2336_v54, %v3038_v16  ;;  %v1605_v0 = vpop.f32.mrb[93].mxu0 }
 0x305   :  { %v1606_v14 = vadd.f32 %v3038_v16, %v1605_v0 }
 0x306   :  { %1686 = vst.msk [vmem:[%s3367_s7 + $0x1e8] sm:$0xff] %vm1624_vm2, %v1611_v11 }
 0x307   :  { %1685 = vst.msk [vmem:[%s3367_s7 + $0x1e0] sm:$0xff] %vm1624_vm2, %v1606_v14  ;;  %v2339_v15 = vpop.f32.mrb[94].mxu0 }
 0x308   :  { %v1621_v10 = vadd.f32 %v2339_v15, %v3038_v16  ;;  %v1615_v19 = vpop.f32.mrb[95].mxu0 }
 0x309   :  { %v1616_v51 = vadd.f32 %v3038_v16, %v1615_v19 }
 0x30a   :  { %1688 = vst.msk [vmem:[%s3367_s7 + $0x1f8] sm:$0xff] %vm1624_vm2, %v1621_v10 }
 0x30b   :  { %1687 = vst.msk [vmem:[%s3367_s7 + $0x1f0] sm:$0xff] %vm1624_vm2, %v1616_v51 }

</bundles_post_ra>
